<compile_context>
chip_gen: v7x
topology: tpu7x:2x2x1
jax: 0.10.0
libtpu: 0.0.40
codegen_flags: <defaults>
</compile_context>

<pallas_src>
import functools

import jax
import jax.numpy as jnp
from jax import lax
from jax.experimental import pallas as pl
from jax.experimental.pallas import tpu as pltpu

LN_EPS = 1e-5  # nn.LayerNorm default


# --------------------------------------------------------------------------
# small math helpers (pure jnp; used both inside the kernel and the reference)
# --------------------------------------------------------------------------
def _layernorm(x, g, b):
    mu = jnp.mean(x, axis=-1, keepdims=True)
    xc = x - mu
    var = jnp.mean(xc * xc, axis=-1, keepdims=True)
    return xc * lax.rsqrt(var + LN_EPS) * g + b


def _gelu_tanh(x):
    # tanh-form GELU: runs on the EUP, frees VPU slots.  |err vs exact| <~ 1e-3.
    c = 0.7978845608028654  # sqrt(2/pi)
    return 0.5 * x * (1.0 + jnp.tanh(c * (x + 0.044715 * x * x * x)))


def _softmax_last_kernel(x):
    m = jnp.max(x, axis=-1, keepdims=True)
    e = jnp.exp(x - m)
    return e * pl.reciprocal(jnp.sum(e, axis=-1, keepdims=True), approx=True)


# --------------------------------------------------------------------------
# fused ViT kernel: grid = (batch_tile, layer)
# --------------------------------------------------------------------------
def vit_kernel(data_ref, emb_w_ref, emb_b_ref, pos_ref,
               ln1g_ref, ln1b_ref, wqkv_ref, wo_ref, bo_ref,
               ln2g_ref, ln2b_ref, w1_ref, b1_ref, w2_ref, b2_ref,
               lnfg_ref, lnfb_ref,
               out_ref, x_sc,
               *, heads, dim_head, scale, bt, n):
    l = pl.program_id(1)
    rows = bt * n
    inner = heads * dim_head

    # ---- first layer of this batch tile: patch embedding + pos embedding ----
    @pl.when(l == 0)
    def _embed():
        d2 = data_ref[...].reshape(rows, -1)                      # (R, S)
        y = jnp.dot(d2.astype(jnp.bfloat16), emb_w_ref[...],
                    preferred_element_type=jnp.float32)           # (R, D)
        y = y + emb_b_ref[...]
        y = y.reshape(bt, n, -1) + pos_ref[...]                   # + pos (1,N,D)
        x_sc[...] = y.reshape(rows, -1)
        # dropout = identity (eval)

    x = x_sc[...]                                                 # (R, D) f32

    # ---- PreNorm + multi-head self-attention (fused QKV matmul) ----
    xn = _layernorm(x, ln1g_ref[...], ln1b_ref[...])
    qkv = jnp.dot(xn.astype(jnp.bfloat16), wqkv_ref[...],
                  preferred_element_type=jnp.float32)             # (R, 3*inner)
    q = qkv[:, :inner]
    k = qkv[:, inner:2 * inner]
    v = qkv[:, 2 * inner:]

    wo = wo_ref[...]                                              # (inner, D) bf16
    attn_acc = jnp.zeros_like(x)                                  # (R, D) f32
    for h in range(heads):                                        # static unroll
        c0 = h * dim_head
        qh = q[:, c0:c0 + dim_head].reshape(bt, n, dim_head)
        kh = k[:, c0:c0 + dim_head].reshape(bt, n, dim_head)
        vh = v[:, c0:c0 + dim_head].reshape(bt, n, dim_head)
        dots = jnp.einsum('bid,bjd->bij',
                          qh.astype(jnp.bfloat16), kh.astype(jnp.bfloat16),
                          preferred_element_type=jnp.float32) * scale
        attn = _softmax_last_kernel(dots)                         # (bt, n, n) f32
        oh = jnp.einsum('bij,bjd->bid',
                        attn.astype(jnp.bfloat16), vh.astype(jnp.bfloat16),
                        preferred_element_type=jnp.float32)       # (bt, n, Dh)
        oh2 = oh.reshape(rows, dim_head)
        # equivalent to concat(heads) @ W_o : accumulate per-head partial products
        attn_acc = attn_acc + jnp.dot(oh2.astype(jnp.bfloat16),
                                      wo[c0:c0 + dim_head, :],
                                      preferred_element_type=jnp.float32)
    x = x + attn_acc + bo_ref[...]                                # residual

    # ---- PreNorm + feed-forward ----
    xn2 = _layernorm(x, ln2g_ref[...], ln2b_ref[...])
    h1 = jnp.dot(xn2.astype(jnp.bfloat16), w1_ref[...],
                 preferred_element_type=jnp.float32) + b1_ref[...]
    h1 = _gelu_tanh(h1)
    f = jnp.dot(h1.astype(jnp.bfloat16), w2_ref[...],
                preferred_element_type=jnp.float32) + b2_ref[...]
    x = x + f                                                     # residual
    x_sc[...] = x

    # ---- last layer: final LayerNorm (mlp_head_1) and single HBM store ----
    @pl.when(l == pl.num_programs(1) - 1)
    def _finalize():
        y = _layernorm(x, lnfg_ref[...], lnfb_ref[...])
        out_ref[...] = y.reshape(bt, n, -1).astype(out_ref.dtype)


# --------------------------------------------------------------------------
# pallas_call wrapper
# --------------------------------------------------------------------------
def _pick_batch_tile(batch, n_tokens, max_rows=512):
    # Largest batch divisor so the per-step row count stays MXU-friendly.
    best = 1
    for d in range(1, batch + 1):
        if batch % d == 0 and d * n_tokens <= max_rows:
            best = d
    return best


def vit_forward_pallas(data, params, *, heads, dim_head):
    B, N, S = data.shape
    D = params["emb_w"].shape[1]
    depth = params["wqkv"].shape[0]
    inner = heads * dim_head
    M = params["w1"].shape[-1]

    bt = _pick_batch_tile(B, N)
    rows = bt * N
    grid = (B // bt, depth)

    def _const_spec(shape):
        nd = len(shape)
        return pl.BlockSpec(shape, lambda i, l: (0,) * nd)

    def _layer_spec(shape):
        nd = len(shape)
        return pl.BlockSpec((None,) + shape, lambda i, l: (l,) + (0,) * nd)

    in_specs = [
        pl.BlockSpec((bt, N, S), lambda i, l: (i, 0, 0)),          # data
        _const_spec((S, D)),                                       # emb_w (bf16)
        _const_spec((1, D)),                                       # emb_b
        _const_spec((1, N, D)),                                    # pos
        _layer_spec((1, D)), _layer_spec((1, D)),                  # ln1 gamma/beta
        _layer_spec((D, 3 * inner)),                               # W_qkv (bf16)
        _layer_spec((inner, D)), _layer_spec((1, D)),              # W_o (bf16), b_o
        _layer_spec((1, D)), _layer_spec((1, D)),                  # ln2 gamma/beta
        _layer_spec((D, M)), _layer_spec((1, M)),                  # W1 (bf16), b1
        _layer_spec((M, D)), _layer_spec((1, D)),                  # W2 (bf16), b2
        _const_spec((1, D)), _const_spec((1, D)),                  # final LN gamma/beta
    ]

    # advisory cost estimate for the XLA scheduler
    mm_flops = 2 * B * N * (S * D + depth * (D * 3 * inner + inner * D + 2 * D * M))
    attn_flops = depth * 2 * B * heads * (2 * N * N * dim_head)
    transcendentals = depth * B * N * (heads * N + M)
    bytes_accessed = int(data.nbytes) + B * N * D * 4 + int(
        sum(int(x.nbytes) for x in jax.tree_util.tree_leaves(params)))

    kern = functools.partial(vit_kernel, heads=heads, dim_head=dim_head,
                             scale=dim_head ** (-0.5), bt=bt, n=N)

    return pl.pallas_call(
        kern,
        out_shape=jax.ShapeDtypeStruct((B, N, D), jnp.float32),
        grid=grid,
        in_specs=in_specs,
        out_specs=pl.BlockSpec((bt, N, D), lambda i, l: (i, 0, 0)),
        scratch_shapes=[pltpu.VMEM((rows, D), jnp.float32)],
        compiler_params=pltpu.CompilerParams(
            dimension_semantics=("parallel", "arbitrary")),
        cost_estimate=pl.CostEstimate(
            flops=int(mm_flops + attn_flops),
            transcendentals=int(transcendentals),
            bytes_accessed=int(bytes_accessed)),
    )(data, params["emb_w"], params["emb_b"], params["pos"],
      params["ln1_g"], params["ln1_b"], params["wqkv"],
      params["wo"], params["bo"], params["ln2_g"], params["ln2_b"],
      params["w1"], params["b1"], params["w2"], params["b2"],
      params["lnf_g"], params["lnf_b"])


# --------------------------------------------------------------------------
# parameter init (PyTorch-like shapes; matmul weights stored bf16, layer-stacked)
# --------------------------------------------------------------------------
def _linear_params(key, fan_in, fan_out, bias=True):
    # PyTorch nn.Linear default init: U(-1/sqrt(fan_in), 1/sqrt(fan_in)).
    bound = 1.0 / (fan_in ** 0.5)
    kw, kb = jax.random.split(key)
    w = jax.random.uniform(kw, (fan_in, fan_out), jnp.float32, -bound, bound)
    if not bias:
        return w, None
    b = jax.random.uniform(kb, (1, fan_out), jnp.float32, -bound, bound)
    return w, b


def init_vit_params(key, *, sequence_len, num_patches, dim, depth, heads,
                    dim_head, mlp_dim):
    inner = heads * dim_head
    keys = jax.random.split(key, depth + 2)

    emb_w, emb_b = _linear_params(keys[0], sequence_len, dim)
    pos = jax.random.normal(keys[1], (1, num_patches, dim), jnp.float32)

    wqkv, wo, bo, w1, b1, w2, b2 = [], [], [], [], [], [], []
    for layer in range(depth):
        lk = jax.random.split(keys[2 + layer], 4)
        wqkv_l, _ = _linear_params(lk[0], dim, inner * 3, bias=False)  # to_qkv (no bias)
        wo_l, bo_l = _linear_params(lk[1], inner, dim)                 # to_out
        w1_l, b1_l = _linear_params(lk[2], dim, mlp_dim)               # ff layer 1
        w2_l, b2_l = _linear_params(lk[3], mlp_dim, dim)               # ff layer 2
        wqkv.append(wqkv_l); wo.append(wo_l); bo.append(bo_l)
        w1.append(w1_l); b1.append(b1_l); w2.append(w2_l); b2.append(b2_l)

    stack = lambda xs: jnp.stack(xs, axis=0)
    bf16 = lambda a: a.astype(jnp.bfloat16)

    return dict(
        emb_w=bf16(emb_w), emb_b=emb_b, pos=pos,
        ln1_g=jnp.ones((depth, 1, dim), jnp.float32),
        ln1_b=jnp.zeros((depth, 1, dim), jnp.float32),
        wqkv=bf16(stack(wqkv)),
        wo=bf16(stack(wo)), bo=stack(bo),
        ln2_g=jnp.ones((depth, 1, dim), jnp.float32),
        ln2_b=jnp.zeros((depth, 1, dim), jnp.float32),
        w1=bf16(stack(w1)), b1=stack(b1),
        w2=bf16(stack(w2)), b2=stack(b2),
        lnf_g=jnp.ones((1, dim), jnp.float32),
        lnf_b=jnp.zeros((1, dim), jnp.float32),
    )


# --------------------------------------------------------------------------
# pure-JAX f32 reference (exact-erf GELU, exact softmax; bf16 weights upcast)
# --------------------------------------------------------------------------
def vit_forward_ref(data, params, *, heads, dim_head):
    f32 = lambda a: a.astype(jnp.float32)
    x = data @ f32(params["emb_w"]) + params["emb_b"] + params["pos"]
    B, N, D = x.shape
    depth = params["wqkv"].shape[0]
    inner = heads * dim_head
    scale = dim_head ** (-0.5)
    for l in range(depth):
        xn = _layernorm(x, params["ln1_g"][l], params["ln1_b"][l])
        qkv = xn @ f32(params["wqkv"][l])
        q, k, v = (qkv[..., :inner], qkv[..., inner:2 * inner], qkv[..., 2 * inner:])
        split = lambda t: t.reshape(B, N, heads, dim_head).transpose(0, 2, 1, 3)
        q, k, v = split(q), split(k), split(v)
        dots = jnp.einsum('bhid,bhjd->bhij', q, k) * scale
        attn = jax.nn.softmax(dots, axis=-1)
        o = jnp.einsum('bhij,bhjd->bhid', attn, v)
        o = o.transpose(0, 2, 1, 3).reshape(B, N, inner)
        x = x + (o @ f32(params["wo"][l]) + params["bo"][l])
        xn = _layernorm(x, params["ln2_g"][l], params["ln2_b"][l])
        h = xn @ f32(params["w1"][l]) + params["b1"][l]
        h = 0.5 * h * (1.0 + lax.erf(h * 0.7071067811865476))     # exact GELU
        x = x + (h @ f32(params["w2"][l]) + params["b2"][l])
    return _layernorm(x, params["lnf_g"], params["lnf_b"])


# --------------------------------------------------------------------------
if __name__ == "__main__":
    # Small shapes consistent with the module's forward (flag_em=False path):
    # data is [batch, num_patches, sequence_len].
    B, NUM_PATCHES, SEQ_LEN = 2, 8, 64
    DIM, DEPTH, HEADS, DIM_HEAD, MLP_DIM = 128, 2, 4, 32, 256

    root = jax.random.PRNGKey(0)
    k_data, k_param = jax.random.split(root)
    data = jax.random.normal(k_data, (B, NUM_PATCHES, SEQ_LEN), jnp.float32)
    params = init_vit_params(k_param, sequence_len=SEQ_LEN, num_patches=NUM_PATCHES,
                             dim=DIM, depth=DEPTH, heads=HEADS,
                             dim_head=DIM_HEAD, mlp_dim=MLP_DIM)

    out = vit_forward_pallas(data, params, heads=HEADS, dim_head=DIM_HEAD)
    out = jax.block_until_ready(out)

    ref = vit_forward_ref(data, params, heads=HEADS, dim_head=DIM_HEAD)
    assert out.shape == (B, NUM_PATCHES, DIM)
    # bf16 MXU inputs vs f32 reference: use a bf16-appropriate tolerance.
    assert jnp.allclose(out, ref, atol=5e-2, rtol=5e-2), (
        "mismatch vs JAX reference, max abs err = "
        f"{float(jnp.max(jnp.abs(out - ref)))}")

    print("KERNEL_OK")
</pallas_src>

<mosaic_0001>
module attributes {stable_mosaic.version = 11 : i64} {
  func.func @vit_kernel(%arg0: i32, %arg1: i32, %arg2: memref<2x8x64xf32, #tpu.memory_space<vmem>>, %arg3: memref<64x128xbf16, #tpu.memory_space<vmem>>, %arg4: memref<1x128xf32, #tpu.memory_space<vmem>>, %arg5: memref<1x8x128xf32, #tpu.memory_space<vmem>>, %arg6: memref<1x1x128xf32, #tpu.memory_space<vmem>>, %arg7: memref<1x1x128xf32, #tpu.memory_space<vmem>>, %arg8: memref<1x128x384xbf16, #tpu.memory_space<vmem>>, %arg9: memref<1x128x128xbf16, #tpu.memory_space<vmem>>, %arg10: memref<1x1x128xf32, #tpu.memory_space<vmem>>, %arg11: memref<1x1x128xf32, #tpu.memory_space<vmem>>, %arg12: memref<1x1x128xf32, #tpu.memory_space<vmem>>, %arg13: memref<1x128x256xbf16, #tpu.memory_space<vmem>>, %arg14: memref<1x1x256xf32, #tpu.memory_space<vmem>>, %arg15: memref<1x256x128xbf16, #tpu.memory_space<vmem>>, %arg16: memref<1x1x128xf32, #tpu.memory_space<vmem>>, %arg17: memref<1x128xf32, #tpu.memory_space<vmem>>, %arg18: memref<1x128xf32, #tpu.memory_space<vmem>>, %arg19: memref<2x8x128xf32, #tpu.memory_space<vmem>>, %arg20: memref<16x128xf32, #tpu.memory_space<vmem>>) attributes {dimension_semantics = [#tpu.dimension_semantics<parallel>, #tpu.dimension_semantics<arbitrary>], iteration_bounds = array<i64: 1, 2>, scalar_prefetch = 0 : i64, scratch_operands = 1 : i64, tpu.core_type = #tpu.core_type<tc>, window_params = [{transform_indices = @transform_0, window_bounds = array<i64: 2, 8, 64>}, {pipeline_mode = #tpu.pipeline_mode<synchronous>, transform_indices = @transform_1, window_bounds = array<i64: 64, 128>}, {pipeline_mode = #tpu.pipeline_mode<synchronous>, transform_indices = @transform_2, window_bounds = array<i64: 1, 128>}, {pipeline_mode = #tpu.pipeline_mode<synchronous>, transform_indices = @transform_3, window_bounds = array<i64: 1, 8, 128>}, {transform_indices = @transform_4, window_bounds = array<i64: 1, 1, 128>}, {transform_indices = @transform_5, window_bounds = array<i64: 1, 1, 128>}, {transform_indices = @transform_6, window_bounds = array<i64: 1, 128, 384>}, {transform_indices = @transform_7, window_bounds = array<i64: 1, 128, 128>}, {transform_indices = @transform_8, window_bounds = array<i64: 1, 1, 128>}, {transform_indices = @transform_9, window_bounds = array<i64: 1, 1, 128>}, {transform_indices = @transform_10, window_bounds = array<i64: 1, 1, 128>}, {transform_indices = @transform_11, window_bounds = array<i64: 1, 128, 256>}, {transform_indices = @transform_12, window_bounds = array<i64: 1, 1, 256>}, {transform_indices = @transform_13, window_bounds = array<i64: 1, 256, 128>}, {transform_indices = @transform_14, window_bounds = array<i64: 1, 1, 128>}, {pipeline_mode = #tpu.pipeline_mode<synchronous>, transform_indices = @transform_15, window_bounds = array<i64: 1, 128>}, {pipeline_mode = #tpu.pipeline_mode<synchronous>, transform_indices = @transform_16, window_bounds = array<i64: 1, 128>}, {transform_indices = @transform_17, window_bounds = array<i64: 2, 8, 128>}]} {
    %c0_i32 = arith.constant 0 : i32
    %0 = arith.cmpi eq, %arg1, %c0_i32 : i32
    %1 = arith.extui %0 : i1 to i32
    %c0_i32_0 = arith.constant 0 : i32
    %2 = arith.cmpi ne, %1, %c0_i32_0 : i32
    scf.if %2 {
      %c0_79 = arith.constant 0 : index
      %c0_80 = arith.constant 0 : index
      %c0_81 = arith.constant 0 : index
      %217 = vector.load %arg2[%c0_79, %c0_80, %c0_81] : memref<2x8x64xf32, #tpu.memory_space<vmem>>, vector<2x8x64xf32>
      %218 = vector.shape_cast %217 : vector<2x8x64xf32> to vector<16x64xf32>
      %219 = arith.truncf %218 : vector<16x64xf32> to vector<16x64xbf16>
      %c0_82 = arith.constant 0 : index
      %c0_83 = arith.constant 0 : index
      %220 = vector.load %arg3[%c0_82, %c0_83] : memref<64x128xbf16, #tpu.memory_space<vmem>>, vector<64x128xbf16>
      %cst_84 = arith.constant dense<0.000000e+00> : vector<16x128xf32>
      %221 = tpu.matmul %219, %220, %cst_84 {dimension_numbers = #tpu.dot_dimension_numbers<[1], [0], [0], [1], [0, 0, 1, 1], [], []>} : vector<16x64xbf16>, vector<64x128xbf16>, vector<16x128xf32> -> vector<16x128xf32>
      %c0_85 = arith.constant 0 : index
      %c0_86 = arith.constant 0 : index
      %222 = vector.load %arg4[%c0_85, %c0_86] : memref<1x128xf32, #tpu.memory_space<vmem>>, vector<1x128xf32>
      %223 = vector.broadcast %222 : vector<1x128xf32> to vector<16x128xf32>
      %224 = arith.addf %221, %223 : vector<16x128xf32>
      %225 = vector.shape_cast %224 : vector<16x128xf32> to vector<2x8x128xf32>
      %c0_87 = arith.constant 0 : index
      %c0_88 = arith.constant 0 : index
      %c0_89 = arith.constant 0 : index
      %226 = vector.load %arg5[%c0_87, %c0_88, %c0_89] : memref<1x8x128xf32, #tpu.memory_space<vmem>>, vector<1x8x128xf32>
      %227 = vector.broadcast %226 : vector<1x8x128xf32> to vector<2x8x128xf32>
      %228 = arith.addf %225, %227 : vector<2x8x128xf32>
      %229 = vector.shape_cast %228 : vector<2x8x128xf32> to vector<16x128xf32>
      %c0_90 = arith.constant 0 : index
      %c0_91 = arith.constant 0 : index
      %230 = vector.load %arg20[%c0_90, %c0_91] : memref<16x128xf32, #tpu.memory_space<vmem>>, vector<16x128xf32>
      tpu.vector_store %arg20[%c0_90, %c0_91], %229 {strides = array<i32>} : memref<16x128xf32, #tpu.memory_space<vmem>>, vector<16x128xf32>,
    } else {
    }
    %c0 = arith.constant 0 : index
    %c0_1 = arith.constant 0 : index
    %3 = vector.load %arg20[%c0, %c0_1] : memref<16x128xf32, #tpu.memory_space<vmem>>, vector<16x128xf32>
    %c0_2 = arith.constant 0 : index
    %c0_3 = arith.constant 0 : index
    %c0_4 = arith.constant 0 : index
    %4 = vector.load %arg6[%c0_2, %c0_3, %c0_4] : memref<1x1x128xf32, #tpu.memory_space<vmem>>, vector<1x1x128xf32>
    %5 = vector.shape_cast %4 : vector<1x1x128xf32> to vector<1x128xf32>
    %c0_5 = arith.constant 0 : index
    %c0_6 = arith.constant 0 : index
    %c0_7 = arith.constant 0 : index
    %6 = vector.load %arg7[%c0_5, %c0_6, %c0_7] : memref<1x1x128xf32, #tpu.memory_space<vmem>>, vector<1x1x128xf32>
    %7 = vector.shape_cast %6 : vector<1x1x128xf32> to vector<1x128xf32>
    %cst = arith.constant dense<0.000000e+00> : vector<16xf32>
    %8 = vector.multi_reduction <add>, %3, %cst [1] : vector<16x128xf32> to vector<16xf32>
    %9 = vector.shape_cast %8 : vector<16xf32> to vector<16x1xf32>
    %cst_8 = arith.constant 1.280000e+02 : f32
    %10 = vector.broadcast %cst_8 : f32 to vector<16x1xf32>
    %11 = arith.divf %9, %10 : vector<16x1xf32>
    %12 = vector.broadcast %11 : vector<16x1xf32> to vector<16x128xf32>
    %13 = arith.subf %3, %12 : vector<16x128xf32>
    %14 = arith.mulf %13, %13 : vector<16x128xf32>
    %cst_9 = arith.constant dense<0.000000e+00> : vector<16xf32>
    %15 = vector.multi_reduction <add>, %14, %cst_9 [1] : vector<16x128xf32> to vector<16xf32>
    %16 = vector.shape_cast %15 : vector<16xf32> to vector<16x1xf32>
    %cst_10 = arith.constant 1.280000e+02 : f32
    %17 = vector.broadcast %cst_10 : f32 to vector<16x1xf32>
    %18 = arith.divf %16, %17 : vector<16x1xf32>
    %cst_11 = arith.constant 9.99999974E-6 : f32
    %19 = vector.broadcast %cst_11 : f32 to vector<16x1xf32>
    %20 = arith.addf %18, %19 : vector<16x1xf32>
    %21 = math.rsqrt %20 : vector<16x1xf32>
    %22 = vector.broadcast %21 : vector<16x1xf32> to vector<16x128xf32>
    %23 = arith.mulf %13, %22 : vector<16x128xf32>
    %24 = vector.broadcast %5 : vector<1x128xf32> to vector<16x128xf32>
    %25 = arith.mulf %23, %24 : vector<16x128xf32>
    %26 = vector.broadcast %7 : vector<1x128xf32> to vector<16x128xf32>
    %27 = arith.addf %25, %26 : vector<16x128xf32>
    %28 = arith.truncf %27 : vector<16x128xf32> to vector<16x128xbf16>
    %c0_12 = arith.constant 0 : index
    %c0_13 = arith.constant 0 : index
    %c0_14 = arith.constant 0 : index
    %29 = vector.load %arg8[%c0_12, %c0_13, %c0_14] : memref<1x128x384xbf16, #tpu.memory_space<vmem>>, vector<1x128x384xbf16>
    %30 = vector.shape_cast %29 : vector<1x128x384xbf16> to vector<128x384xbf16>
    %cst_15 = arith.constant dense<0.000000e+00> : vector<16x384xf32>
    %31 = tpu.matmul %28, %30, %cst_15 {dimension_numbers = #tpu.dot_dimension_numbers<[1], [0], [0], [1], [0, 0, 1, 1], [], []>} : vector<16x128xbf16>, vector<128x384xbf16>, vector<16x384xf32> -> vector<16x384xf32>
    %32 = vector.extract_strided_slice %31 {offsets = [0, 0], sizes = [16, 128], strides = [1, 1]} : vector<16x384xf32> to vector<16x128xf32>
    %33 = vector.extract_strided_slice %31 {offsets = [0, 128], sizes = [16, 128], strides = [1, 1]} : vector<16x384xf32> to vector<16x128xf32>
    %34 = vector.extract_strided_slice %31 {offsets = [0, 256], sizes = [16, 128], strides = [1, 1]} : vector<16x384xf32> to vector<16x128xf32>
    %c0_16 = arith.constant 0 : index
    %c0_17 = arith.constant 0 : index
    %c0_18 = arith.constant 0 : index
    %35 = vector.load %arg9[%c0_16, %c0_17, %c0_18] : memref<1x128x128xbf16, #tpu.memory_space<vmem>>, vector<1x128x128xbf16>
    %36 = vector.shape_cast %35 : vector<1x128x128xbf16> to vector<128x128xbf16>
    %cst_19 = arith.constant 0.000000e+00 : f32
    %37 = vector.broadcast %cst_19 : f32 to vector<16x128xf32>
    %38 = vector.extract_strided_slice %32 {offsets = [0, 0], sizes = [16, 32], strides = [1, 1]} : vector<16x128xf32> to vector<16x32xf32>
    %39 = vector.shape_cast %38 : vector<16x32xf32> to vector<2x8x32xf32>
    %40 = vector.extract_strided_slice %33 {offsets = [0, 0], sizes = [16, 32], strides = [1, 1]} : vector<16x128xf32> to vector<16x32xf32>
    %41 = vector.shape_cast %40 : vector<16x32xf32> to vector<2x8x32xf32>
    %42 = vector.extract_strided_slice %34 {offsets = [0, 0], sizes = [16, 32], strides = [1, 1]} : vector<16x128xf32> to vector<16x32xf32>
    %43 = vector.shape_cast %42 : vector<16x32xf32> to vector<2x8x32xf32>
    %44 = arith.truncf %39 : vector<2x8x32xf32> to vector<2x8x32xbf16>
    %45 = arith.truncf %41 : vector<2x8x32xf32> to vector<2x8x32xbf16>
    "tpu.trace_start"() <{level = 10 : i32, message = "bid,bjd->bij"}> : () -> ()
    %cst_20 = arith.constant dense<0.000000e+00> : vector<2x8x8xf32>
    %46 = tpu.matmul %44, %45, %cst_20 {dimension_numbers = #tpu.dot_dimension_numbers<[2], [2], [1], [1], [0, 0, 0, 1, 1, 1], [0], [0]>} : vector<2x8x32xbf16>, vector<2x8x32xbf16>, vector<2x8x8xf32> -> vector<2x8x8xf32>
    "tpu.trace_stop"() : () -> ()
    %cst_21 = arith.constant 0.176776692 : f32
    %47 = vector.broadcast %cst_21 : f32 to vector<2x8x8xf32>
    %48 = arith.mulf %46, %47 : vector<2x8x8xf32>
    %cst_22 = arith.constant dense<0xFF800000> : vector<2x8xf32>
    %49 = vector.multi_reduction <maximumf>, %48, %cst_22 [2] : vector<2x8x8xf32> to vector<2x8xf32>
    %50 = vector.shape_cast %49 : vector<2x8xf32> to vector<2x8x1xf32>
    %51 = vector.broadcast %50 : vector<2x8x1xf32> to vector<2x8x8xf32>
    %52 = arith.subf %48, %51 : vector<2x8x8xf32>
    %53 = math.exp %52 : vector<2x8x8xf32>
    %cst_23 = arith.constant dense<0.000000e+00> : vector<2x8xf32>
    %54 = vector.multi_reduction <add>, %53, %cst_23 [2] : vector<2x8x8xf32> to vector<2x8xf32>
    %55 = vector.shape_cast %54 : vector<2x8xf32> to vector<2x8x1xf32>
    %56 = tpu.reciprocal %55 {approx = true} : vector<2x8x1xf32> -> vector<2x8x1xf32>
    %57 = vector.broadcast %56 : vector<2x8x1xf32> to vector<2x8x8xf32>
    %58 = arith.mulf %53, %57 : vector<2x8x8xf32>
    %59 = arith.truncf %58 : vector<2x8x8xf32> to vector<2x8x8xbf16>
    %60 = arith.truncf %43 : vector<2x8x32xf32> to vector<2x8x32xbf16>
    "tpu.trace_start"() <{level = 10 : i32, message = "bij,bjd->bid"}> : () -> ()
    %cst_24 = arith.constant dense<0.000000e+00> : vector<2x8x32xf32>
    %61 = tpu.matmul %59, %60, %cst_24 {dimension_numbers = #tpu.dot_dimension_numbers<[2], [1], [1], [2], [0, 0, 0, 1, 1, 2], [0], [0]>} : vector<2x8x8xbf16>, vector<2x8x32xbf16>, vector<2x8x32xf32> -> vector<2x8x32xf32>
    "tpu.trace_stop"() : () -> ()
    %62 = vector.shape_cast %61 : vector<2x8x32xf32> to vector<16x32xf32>
    %63 = arith.truncf %62 : vector<16x32xf32> to vector<16x32xbf16>
    %64 = vector.extract_strided_slice %36 {offsets = [0, 0], sizes = [32, 128], strides = [1, 1]} : vector<128x128xbf16> to vector<32x128xbf16>
    %cst_25 = arith.constant dense<0.000000e+00> : vector<16x128xf32>
    %65 = tpu.matmul %63, %64, %cst_25 {dimension_numbers = #tpu.dot_dimension_numbers<[1], [0], [0], [1], [0, 0, 1, 1], [], []>} : vector<16x32xbf16>, vector<32x128xbf16>, vector<16x128xf32> -> vector<16x128xf32>
    %66 = arith.addf %37, %65 : vector<16x128xf32>
    %67 = vector.extract_strided_slice %32 {offsets = [0, 32], sizes = [16, 32], strides = [1, 1]} : vector<16x128xf32> to vector<16x32xf32>
    %68 = vector.shape_cast %67 : vector<16x32xf32> to vector<2x8x32xf32>
    %69 = vector.extract_strided_slice %33 {offsets = [0, 32], sizes = [16, 32], strides = [1, 1]} : vector<16x128xf32> to vector<16x32xf32>
    %70 = vector.shape_cast %69 : vector<16x32xf32> to vector<2x8x32xf32>
    %71 = vector.extract_strided_slice %34 {offsets = [0, 32], sizes = [16, 32], strides = [1, 1]} : vector<16x128xf32> to vector<16x32xf32>
    %72 = vector.shape_cast %71 : vector<16x32xf32> to vector<2x8x32xf32>
    %73 = arith.truncf %68 : vector<2x8x32xf32> to vector<2x8x32xbf16>
    %74 = arith.truncf %70 : vector<2x8x32xf32> to vector<2x8x32xbf16>
    "tpu.trace_start"() <{level = 10 : i32, message = "bid,bjd->bij"}> : () -> ()
    %cst_26 = arith.constant dense<0.000000e+00> : vector<2x8x8xf32>
    %75 = tpu.matmul %73, %74, %cst_26 {dimension_numbers = #tpu.dot_dimension_numbers<[2], [2], [1], [1], [0, 0, 0, 1, 1, 1], [0], [0]>} : vector<2x8x32xbf16>, vector<2x8x32xbf16>, vector<2x8x8xf32> -> vector<2x8x8xf32>
    "tpu.trace_stop"() : () -> ()
    %cst_27 = arith.constant 0.176776692 : f32
    %76 = vector.broadcast %cst_27 : f32 to vector<2x8x8xf32>
    %77 = arith.mulf %75, %76 : vector<2x8x8xf32>
    %cst_28 = arith.constant dense<0xFF800000> : vector<2x8xf32>
    %78 = vector.multi_reduction <maximumf>, %77, %cst_28 [2] : vector<2x8x8xf32> to vector<2x8xf32>
    %79 = vector.shape_cast %78 : vector<2x8xf32> to vector<2x8x1xf32>
    %80 = vector.broadcast %79 : vector<2x8x1xf32> to vector<2x8x8xf32>
    %81 = arith.subf %77, %80 : vector<2x8x8xf32>
    %82 = math.exp %81 : vector<2x8x8xf32>
    %cst_29 = arith.constant dense<0.000000e+00> : vector<2x8xf32>
    %83 = vector.multi_reduction <add>, %82, %cst_29 [2] : vector<2x8x8xf32> to vector<2x8xf32>
    %84 = vector.shape_cast %83 : vector<2x8xf32> to vector<2x8x1xf32>
    %85 = tpu.reciprocal %84 {approx = true} : vector<2x8x1xf32> -> vector<2x8x1xf32>
    %86 = vector.broadcast %85 : vector<2x8x1xf32> to vector<2x8x8xf32>
    %87 = arith.mulf %82, %86 : vector<2x8x8xf32>
    %88 = arith.truncf %87 : vector<2x8x8xf32> to vector<2x8x8xbf16>
    %89 = arith.truncf %72 : vector<2x8x32xf32> to vector<2x8x32xbf16>
    "tpu.trace_start"() <{level = 10 : i32, message = "bij,bjd->bid"}> : () -> ()
    %cst_30 = arith.constant dense<0.000000e+00> : vector<2x8x32xf32>
    %90 = tpu.matmul %88, %89, %cst_30 {dimension_numbers = #tpu.dot_dimension_numbers<[2], [1], [1], [2], [0, 0, 0, 1, 1, 2], [0], [0]>} : vector<2x8x8xbf16>, vector<2x8x32xbf16>, vector<2x8x32xf32> -> vector<2x8x32xf32>
    "tpu.trace_stop"() : () -> ()
    %91 = vector.shape_cast %90 : vector<2x8x32xf32> to vector<16x32xf32>
    %92 = arith.truncf %91 : vector<16x32xf32> to vector<16x32xbf16>
    %93 = vector.extract_strided_slice %36 {offsets = [32, 0], sizes = [32, 128], strides = [1, 1]} : vector<128x128xbf16> to vector<32x128xbf16>
    %cst_31 = arith.constant dense<0.000000e+00> : vector<16x128xf32>
    %94 = tpu.matmul %92, %93, %cst_31 {dimension_numbers = #tpu.dot_dimension_numbers<[1], [0], [0], [1], [0, 0, 1, 1], [], []>} : vector<16x32xbf16>, vector<32x128xbf16>, vector<16x128xf32> -> vector<16x128xf32>
    %95 = arith.addf %66, %94 : vector<16x128xf32>
    %96 = vector.extract_strided_slice %32 {offsets = [0, 64], sizes = [16, 32], strides = [1, 1]} : vector<16x128xf32> to vector<16x32xf32>
    %97 = vector.shape_cast %96 : vector<16x32xf32> to vector<2x8x32xf32>
    %98 = vector.extract_strided_slice %33 {offsets = [0, 64], sizes = [16, 32], strides = [1, 1]} : vector<16x128xf32> to vector<16x32xf32>
    %99 = vector.shape_cast %98 : vector<16x32xf32> to vector<2x8x32xf32>
    %100 = vector.extract_strided_slice %34 {offsets = [0, 64], sizes = [16, 32], strides = [1, 1]} : vector<16x128xf32> to vector<16x32xf32>
    %101 = vector.shape_cast %100 : vector<16x32xf32> to vector<2x8x32xf32>
    %102 = arith.truncf %97 : vector<2x8x32xf32> to vector<2x8x32xbf16>
    %103 = arith.truncf %99 : vector<2x8x32xf32> to vector<2x8x32xbf16>
    "tpu.trace_start"() <{level = 10 : i32, message = "bid,bjd->bij"}> : () -> ()
    %cst_32 = arith.constant dense<0.000000e+00> : vector<2x8x8xf32>
    %104 = tpu.matmul %102, %103, %cst_32 {dimension_numbers = #tpu.dot_dimension_numbers<[2], [2], [1], [1], [0, 0, 0, 1, 1, 1], [0], [0]>} : vector<2x8x32xbf16>, vector<2x8x32xbf16>, vector<2x8x8xf32> -> vector<2x8x8xf32>
    "tpu.trace_stop"() : () -> ()
    %cst_33 = arith.constant 0.176776692 : f32
    %105 = vector.broadcast %cst_33 : f32 to vector<2x8x8xf32>
    %106 = arith.mulf %104, %105 : vector<2x8x8xf32>
    %cst_34 = arith.constant dense<0xFF800000> : vector<2x8xf32>
    %107 = vector.multi_reduction <maximumf>, %106, %cst_34 [2] : vector<2x8x8xf32> to vector<2x8xf32>
    %108 = vector.shape_cast %107 : vector<2x8xf32> to vector<2x8x1xf32>
    %109 = vector.broadcast %108 : vector<2x8x1xf32> to vector<2x8x8xf32>
    %110 = arith.subf %106, %109 : vector<2x8x8xf32>
    %111 = math.exp %110 : vector<2x8x8xf32>
    %cst_35 = arith.constant dense<0.000000e+00> : vector<2x8xf32>
    %112 = vector.multi_reduction <add>, %111, %cst_35 [2] : vector<2x8x8xf32> to vector<2x8xf32>
    %113 = vector.shape_cast %112 : vector<2x8xf32> to vector<2x8x1xf32>
    %114 = tpu.reciprocal %113 {approx = true} : vector<2x8x1xf32> -> vector<2x8x1xf32>
    %115 = vector.broadcast %114 : vector<2x8x1xf32> to vector<2x8x8xf32>
    %116 = arith.mulf %111, %115 : vector<2x8x8xf32>
    %117 = arith.truncf %116 : vector<2x8x8xf32> to vector<2x8x8xbf16>
    %118 = arith.truncf %101 : vector<2x8x32xf32> to vector<2x8x32xbf16>
    "tpu.trace_start"() <{level = 10 : i32, message = "bij,bjd->bid"}> : () -> ()
    %cst_36 = arith.constant dense<0.000000e+00> : vector<2x8x32xf32>
    %119 = tpu.matmul %117, %118, %cst_36 {dimension_numbers = #tpu.dot_dimension_numbers<[2], [1], [1], [2], [0, 0, 0, 1, 1, 2], [0], [0]>} : vector<2x8x8xbf16>, vector<2x8x32xbf16>, vector<2x8x32xf32> -> vector<2x8x32xf32>
    "tpu.trace_stop"() : () -> ()
    %120 = vector.shape_cast %119 : vector<2x8x32xf32> to vector<16x32xf32>
    %121 = arith.truncf %120 : vector<16x32xf32> to vector<16x32xbf16>
    %122 = vector.extract_strided_slice %36 {offsets = [64, 0], sizes = [32, 128], strides = [1, 1]} : vector<128x128xbf16> to vector<32x128xbf16>
    %cst_37 = arith.constant dense<0.000000e+00> : vector<16x128xf32>
    %123 = tpu.matmul %121, %122, %cst_37 {dimension_numbers = #tpu.dot_dimension_numbers<[1], [0], [0], [1], [0, 0, 1, 1], [], []>} : vector<16x32xbf16>, vector<32x128xbf16>, vector<16x128xf32> -> vector<16x128xf32>
    %124 = arith.addf %95, %123 : vector<16x128xf32>
    %125 = vector.extract_strided_slice %32 {offsets = [0, 96], sizes = [16, 32], strides = [1, 1]} : vector<16x128xf32> to vector<16x32xf32>
    %126 = vector.shape_cast %125 : vector<16x32xf32> to vector<2x8x32xf32>
    %127 = vector.extract_strided_slice %33 {offsets = [0, 96], sizes = [16, 32], strides = [1, 1]} : vector<16x128xf32> to vector<16x32xf32>
    %128 = vector.shape_cast %127 : vector<16x32xf32> to vector<2x8x32xf32>
    %129 = vector.extract_strided_slice %34 {offsets = [0, 96], sizes = [16, 32], strides = [1, 1]} : vector<16x128xf32> to vector<16x32xf32>
    %130 = vector.shape_cast %129 : vector<16x32xf32> to vector<2x8x32xf32>
    %131 = arith.truncf %126 : vector<2x8x32xf32> to vector<2x8x32xbf16>
    %132 = arith.truncf %128 : vector<2x8x32xf32> to vector<2x8x32xbf16>
    "tpu.trace_start"() <{level = 10 : i32, message = "bid,bjd->bij"}> : () -> ()
    %cst_38 = arith.constant dense<0.000000e+00> : vector<2x8x8xf32>
    %133 = tpu.matmul %131, %132, %cst_38 {dimension_numbers = #tpu.dot_dimension_numbers<[2], [2], [1], [1], [0, 0, 0, 1, 1, 1], [0], [0]>} : vector<2x8x32xbf16>, vector<2x8x32xbf16>, vector<2x8x8xf32> -> vector<2x8x8xf32>
    "tpu.trace_stop"() : () -> ()
    %cst_39 = arith.constant 0.176776692 : f32
    %134 = vector.broadcast %cst_39 : f32 to vector<2x8x8xf32>
    %135 = arith.mulf %133, %134 : vector<2x8x8xf32>
    %cst_40 = arith.constant dense<0xFF800000> : vector<2x8xf32>
    %136 = vector.multi_reduction <maximumf>, %135, %cst_40 [2] : vector<2x8x8xf32> to vector<2x8xf32>
    %137 = vector.shape_cast %136 : vector<2x8xf32> to vector<2x8x1xf32>
    %138 = vector.broadcast %137 : vector<2x8x1xf32> to vector<2x8x8xf32>
    %139 = arith.subf %135, %138 : vector<2x8x8xf32>
    %140 = math.exp %139 : vector<2x8x8xf32>
    %cst_41 = arith.constant dense<0.000000e+00> : vector<2x8xf32>
    %141 = vector.multi_reduction <add>, %140, %cst_41 [2] : vector<2x8x8xf32> to vector<2x8xf32>
    %142 = vector.shape_cast %141 : vector<2x8xf32> to vector<2x8x1xf32>
    %143 = tpu.reciprocal %142 {approx = true} : vector<2x8x1xf32> -> vector<2x8x1xf32>
    %144 = vector.broadcast %143 : vector<2x8x1xf32> to vector<2x8x8xf32>
    %145 = arith.mulf %140, %144 : vector<2x8x8xf32>
    %146 = arith.truncf %145 : vector<2x8x8xf32> to vector<2x8x8xbf16>
    %147 = arith.truncf %130 : vector<2x8x32xf32> to vector<2x8x32xbf16>
    "tpu.trace_start"() <{level = 10 : i32, message = "bij,bjd->bid"}> : () -> ()
    %cst_42 = arith.constant dense<0.000000e+00> : vector<2x8x32xf32>
    %148 = tpu.matmul %146, %147, %cst_42 {dimension_numbers = #tpu.dot_dimension_numbers<[2], [1], [1], [2], [0, 0, 0, 1, 1, 2], [0], [0]>} : vector<2x8x8xbf16>, vector<2x8x32xbf16>, vector<2x8x32xf32> -> vector<2x8x32xf32>
    "tpu.trace_stop"() : () -> ()
    %149 = vector.shape_cast %148 : vector<2x8x32xf32> to vector<16x32xf32>
    %150 = arith.truncf %149 : vector<16x32xf32> to vector<16x32xbf16>
    %151 = vector.extract_strided_slice %36 {offsets = [96, 0], sizes = [32, 128], strides = [1, 1]} : vector<128x128xbf16> to vector<32x128xbf16>
    %cst_43 = arith.constant dense<0.000000e+00> : vector<16x128xf32>
    %152 = tpu.matmul %150, %151, %cst_43 {dimension_numbers = #tpu.dot_dimension_numbers<[1], [0], [0], [1], [0, 0, 1, 1], [], []>} : vector<16x32xbf16>, vector<32x128xbf16>, vector<16x128xf32> -> vector<16x128xf32>
    %153 = arith.addf %124, %152 : vector<16x128xf32>
    %154 = arith.addf %3, %153 : vector<16x128xf32>
    %c0_44 = arith.constant 0 : index
    %c0_45 = arith.constant 0 : index
    %c0_46 = arith.constant 0 : index
    %155 = vector.load %arg10[%c0_44, %c0_45, %c0_46] : memref<1x1x128xf32, #tpu.memory_space<vmem>>, vector<1x1x128xf32>
    %156 = vector.shape_cast %155 : vector<1x1x128xf32> to vector<1x128xf32>
    %157 = vector.broadcast %156 : vector<1x128xf32> to vector<16x128xf32>
    %158 = arith.addf %154, %157 : vector<16x128xf32>
    %c0_47 = arith.constant 0 : index
    %c0_48 = arith.constant 0 : index
    %c0_49 = arith.constant 0 : index
    %159 = vector.load %arg11[%c0_47, %c0_48, %c0_49] : memref<1x1x128xf32, #tpu.memory_space<vmem>>, vector<1x1x128xf32>
    %160 = vector.shape_cast %159 : vector<1x1x128xf32> to vector<1x128xf32>
    %c0_50 = arith.constant 0 : index
    %c0_51 = arith.constant 0 : index
    %c0_52 = arith.constant 0 : index
    %161 = vector.load %arg12[%c0_50, %c0_51, %c0_52] : memref<1x1x128xf32, #tpu.memory_space<vmem>>, vector<1x1x128xf32>
    %162 = vector.shape_cast %161 : vector<1x1x128xf32> to vector<1x128xf32>
    %cst_53 = arith.constant dense<0.000000e+00> : vector<16xf32>
    %163 = vector.multi_reduction <add>, %158, %cst_53 [1] : vector<16x128xf32> to vector<16xf32>
    %164 = vector.shape_cast %163 : vector<16xf32> to vector<16x1xf32>
    %cst_54 = arith.constant 1.280000e+02 : f32
    %165 = vector.broadcast %cst_54 : f32 to vector<16x1xf32>
    %166 = arith.divf %164, %165 : vector<16x1xf32>
    %167 = vector.broadcast %166 : vector<16x1xf32> to vector<16x128xf32>
    %168 = arith.subf %158, %167 : vector<16x128xf32>
    %169 = arith.mulf %168, %168 : vector<16x128xf32>
    %cst_55 = arith.constant dense<0.000000e+00> : vector<16xf32>
    %170 = vector.multi_reduction <add>, %169, %cst_55 [1] : vector<16x128xf32> to vector<16xf32>
    %171 = vector.shape_cast %170 : vector<16xf32> to vector<16x1xf32>
    %cst_56 = arith.constant 1.280000e+02 : f32
    %172 = vector.broadcast %cst_56 : f32 to vector<16x1xf32>
    %173 = arith.divf %171, %172 : vector<16x1xf32>
    %cst_57 = arith.constant 9.99999974E-6 : f32
    %174 = vector.broadcast %cst_57 : f32 to vector<16x1xf32>
    %175 = arith.addf %173, %174 : vector<16x1xf32>
    %176 = math.rsqrt %175 : vector<16x1xf32>
    %177 = vector.broadcast %176 : vector<16x1xf32> to vector<16x128xf32>
    %178 = arith.mulf %168, %177 : vector<16x128xf32>
    %179 = vector.broadcast %160 : vector<1x128xf32> to vector<16x128xf32>
    %180 = arith.mulf %178, %179 : vector<16x128xf32>
    %181 = vector.broadcast %162 : vector<1x128xf32> to vector<16x128xf32>
    %182 = arith.addf %180, %181 : vector<16x128xf32>
    %183 = arith.truncf %182 : vector<16x128xf32> to vector<16x128xbf16>
    %c0_58 = arith.constant 0 : index
    %c0_59 = arith.constant 0 : index
    %c0_60 = arith.constant 0 : index
    %184 = vector.load %arg13[%c0_58, %c0_59, %c0_60] : memref<1x128x256xbf16, #tpu.memory_space<vmem>>, vector<1x128x256xbf16>
    %185 = vector.shape_cast %184 : vector<1x128x256xbf16> to vector<128x256xbf16>
    %cst_61 = arith.constant dense<0.000000e+00> : vector<16x256xf32>
    %186 = tpu.matmul %183, %185, %cst_61 {dimension_numbers = #tpu.dot_dimension_numbers<[1], [0], [0], [1], [0, 0, 1, 1], [], []>} : vector<16x128xbf16>, vector<128x256xbf16>, vector<16x256xf32> -> vector<16x256xf32>
    %c0_62 = arith.constant 0 : index
    %c0_63 = arith.constant 0 : index
    %c0_64 = arith.constant 0 : index
    %187 = vector.load %arg14[%c0_62, %c0_63, %c0_64] : memref<1x1x256xf32, #tpu.memory_space<vmem>>, vector<1x1x256xf32>
    %188 = vector.shape_cast %187 : vector<1x1x256xf32> to vector<1x256xf32>
    %189 = vector.broadcast %188 : vector<1x256xf32> to vector<16x256xf32>
    %190 = arith.addf %186, %189 : vector<16x256xf32>
    %cst_65 = arith.constant 5.000000e-01 : f32
    %191 = vector.broadcast %cst_65 : f32 to vector<16x256xf32>
    %192 = arith.mulf %191, %190 : vector<16x256xf32>
    %cst_66 = arith.constant 4.471500e-02 : f32
    %193 = vector.broadcast %cst_66 : f32 to vector<16x256xf32>
    %194 = arith.mulf %193, %190 : vector<16x256xf32>
    %195 = arith.mulf %194, %190 : vector<16x256xf32>
    %196 = arith.mulf %195, %190 : vector<16x256xf32>
    %197 = arith.addf %190, %196 : vector<16x256xf32>
    %cst_67 = arith.constant 0.797884583 : f32
    %198 = vector.broadcast %cst_67 : f32 to vector<16x256xf32>
    %199 = arith.mulf %198, %197 : vector<16x256xf32>
    %200 = math.tanh %199 : vector<16x256xf32>
    %cst_68 = arith.constant 1.000000e+00 : f32
    %201 = vector.broadcast %cst_68 : f32 to vector<16x256xf32>
    %202 = arith.addf %201, %200 : vector<16x256xf32>
    %203 = arith.mulf %192, %202 : vector<16x256xf32>
    %204 = arith.truncf %203 : vector<16x256xf32> to vector<16x256xbf16>
    %c0_69 = arith.constant 0 : index
    %c0_70 = arith.constant 0 : index
    %c0_71 = arith.constant 0 : index
    %205 = vector.load %arg15[%c0_69, %c0_70, %c0_71] : memref<1x256x128xbf16, #tpu.memory_space<vmem>>, vector<1x256x128xbf16>
    %206 = vector.shape_cast %205 : vector<1x256x128xbf16> to vector<256x128xbf16>
    %cst_72 = arith.constant dense<0.000000e+00> : vector<16x128xf32>
    %207 = tpu.matmul %204, %206, %cst_72 {dimension_numbers = #tpu.dot_dimension_numbers<[1], [0], [0], [1], [0, 0, 1, 1], [], []>} : vector<16x256xbf16>, vector<256x128xbf16>, vector<16x128xf32> -> vector<16x128xf32>
    %c0_73 = arith.constant 0 : index
    %c0_74 = arith.constant 0 : index
    %c0_75 = arith.constant 0 : index
    %208 = vector.load %arg16[%c0_73, %c0_74, %c0_75] : memref<1x1x128xf32, #tpu.memory_space<vmem>>, vector<1x1x128xf32>
    %209 = vector.shape_cast %208 : vector<1x1x128xf32> to vector<1x128xf32>
    %210 = vector.broadcast %209 : vector<1x128xf32> to vector<16x128xf32>
    %211 = arith.addf %207, %210 : vector<16x128xf32>
    %212 = arith.addf %158, %211 : vector<16x128xf32>
    %c0_76 = arith.constant 0 : index
    %c0_77 = arith.constant 0 : index
    %213 = vector.load %arg20[%c0_76, %c0_77] : memref<16x128xf32, #tpu.memory_space<vmem>>, vector<16x128xf32>
    tpu.vector_store %arg20[%c0_76, %c0_77], %212 {strides = array<i32>} : memref<16x128xf32, #tpu.memory_space<vmem>>, vector<16x128xf32>,
    %c1_i32 = arith.constant 1 : i32
    %214 = arith.cmpi eq, %arg1, %c1_i32 : i32
    %215 = arith.extui %214 : i1 to i32
    %c0_i32_78 = arith.constant 0 : i32
    %216 = arith.cmpi ne, %215, %c0_i32_78 : i32
    scf.if %216 {
      %c0_79 = arith.constant 0 : index
      %c0_80 = arith.constant 0 : index
      %217 = vector.load %arg17[%c0_79, %c0_80] : memref<1x128xf32, #tpu.memory_space<vmem>>, vector<1x128xf32>
      %c0_81 = arith.constant 0 : index
      %c0_82 = arith.constant 0 : index
      %218 = vector.load %arg18[%c0_81, %c0_82] : memref<1x128xf32, #tpu.memory_space<vmem>>, vector<1x128xf32>
      %cst_83 = arith.constant dense<0.000000e+00> : vector<16xf32>
      %219 = vector.multi_reduction <add>, %212, %cst_83 [1] : vector<16x128xf32> to vector<16xf32>
      %220 = vector.shape_cast %219 : vector<16xf32> to vector<16x1xf32>
      %cst_84 = arith.constant 1.280000e+02 : f32
      %221 = vector.broadcast %cst_84 : f32 to vector<16x1xf32>
      %222 = arith.divf %220, %221 : vector<16x1xf32>
      %223 = vector.broadcast %222 : vector<16x1xf32> to vector<16x128xf32>
      %224 = arith.subf %212, %223 : vector<16x128xf32>
      %225 = arith.mulf %224, %224 : vector<16x128xf32>
      %cst_85 = arith.constant dense<0.000000e+00> : vector<16xf32>
      %226 = vector.multi_reduction <add>, %225, %cst_85 [1] : vector<16x128xf32> to vector<16xf32>
      %227 = vector.shape_cast %226 : vector<16xf32> to vector<16x1xf32>
      %cst_86 = arith.constant 1.280000e+02 : f32
      %228 = vector.broadcast %cst_86 : f32 to vector<16x1xf32>
      %229 = arith.divf %227, %228 : vector<16x1xf32>
      %cst_87 = arith.constant 9.99999974E-6 : f32
      %230 = vector.broadcast %cst_87 : f32 to vector<16x1xf32>
      %231 = arith.addf %229, %230 : vector<16x1xf32>
      %232 = math.rsqrt %231 : vector<16x1xf32>
      %233 = vector.broadcast %232 : vector<16x1xf32> to vector<16x128xf32>
      %234 = arith.mulf %224, %233 : vector<16x128xf32>
      %235 = vector.broadcast %217 : vector<1x128xf32> to vector<16x128xf32>
      %236 = arith.mulf %234, %235 : vector<16x128xf32>
      %237 = vector.broadcast %218 : vector<1x128xf32> to vector<16x128xf32>
      %238 = arith.addf %236, %237 : vector<16x128xf32>
      %239 = vector.shape_cast %238 : vector<16x128xf32> to vector<2x8x128xf32>
      %c0_88 = arith.constant 0 : index
      %c0_89 = arith.constant 0 : index
      %c0_90 = arith.constant 0 : index
      %240 = vector.load %arg19[%c0_88, %c0_89, %c0_90] : memref<2x8x128xf32, #tpu.memory_space<vmem>>, vector<2x8x128xf32>
      tpu.vector_store %arg19[%c0_88, %c0_89, %c0_90], %239 {strides = array<i32>} : memref<2x8x128xf32, #tpu.memory_space<vmem>>, vector<2x8x128xf32>,
    } else {
    }
    return
  }
  func.func @transform_0(%arg0: i32, %arg1: i32) -> (i32, i32, i32) {
    %c0_i32 = arith.constant 0 : i32
    %c0_i32_0 = arith.constant 0 : i32
    %c0_i32_1 = arith.constant 0 : i32
    return %arg0, %c0_i32, %c0_i32_0 : i32, i32, i32
  }
  func.func @transform_1(%arg0: i32, %arg1: i32) -> (i32, i32) {
    %c0_i32 = arith.constant 0 : i32
    %c0_i32_0 = arith.constant 0 : i32
    %c0_i32_1 = arith.constant 0 : i32
    return %c0_i32, %c0_i32_0 : i32, i32
  }
  func.func @transform_2(%arg0: i32, %arg1: i32) -> (i32, i32) {
    %c0_i32 = arith.constant 0 : i32
    %c0_i32_0 = arith.constant 0 : i32
    %c0_i32_1 = arith.constant 0 : i32
    return %c0_i32, %c0_i32_0 : i32, i32
  }
  func.func @transform_3(%arg0: i32, %arg1: i32) -> (i32, i32, i32) {
    %c0_i32 = arith.constant 0 : i32
    %c0_i32_0 = arith.constant 0 : i32
    %c0_i32_1 = arith.constant 0 : i32
    %c0_i32_2 = arith.constant 0 : i32
    return %c0_i32, %c0_i32_0, %c0_i32_1 : i32, i32, i32
  }
  func.func @transform_4(%arg0: i32, %arg1: i32) -> (i32, i32, i32) {
    %c0_i32 = arith.constant 0 : i32
    %c0_i32_0 = arith.constant 0 : i32
    %c0_i32_1 = arith.constant 0 : i32
    return %arg1, %c0_i32, %c0_i32_0 : i32, i32, i32
  }
  func.func @transform_5(%arg0: i32, %arg1: i32) -> (i32, i32, i32) {
    %c0_i32 = arith.constant 0 : i32
    %c0_i32_0 = arith.constant 0 : i32
    %c0_i32_1 = arith.constant 0 : i32
    return %arg1, %c0_i32, %c0_i32_0 : i32, i32, i32
  }
  func.func @transform_6(%arg0: i32, %arg1: i32) -> (i32, i32, i32) {
    %c0_i32 = arith.constant 0 : i32
    %c0_i32_0 = arith.constant 0 : i32
    %c0_i32_1 = arith.constant 0 : i32
    return %arg1, %c0_i32, %c0_i32_0 : i32, i32, i32
  }
  func.func @transform_7(%arg0: i32, %arg1: i32) -> (i32, i32, i32) {
    %c0_i32 = arith.constant 0 : i32
    %c0_i32_0 = arith.constant 0 : i32
    %c0_i32_1 = arith.constant 0 : i32
    return %arg1, %c0_i32, %c0_i32_0 : i32, i32, i32
  }
  func.func @transform_8(%arg0: i32, %arg1: i32) -> (i32, i32, i32) {
    %c0_i32 = arith.constant 0 : i32
    %c0_i32_0 = arith.constant 0 : i32
    %c0_i32_1 = arith.constant 0 : i32
    return %arg1, %c0_i32, %c0_i32_0 : i32, i32, i32
  }
  func.func @transform_9(%arg0: i32, %arg1: i32) -> (i32, i32, i32) {
    %c0_i32 = arith.constant 0 : i32
    %c0_i32_0 = arith.constant 0 : i32
    %c0_i32_1 = arith.constant 0 : i32
    return %arg1, %c0_i32, %c0_i32_0 : i32, i32, i32
  }
  func.func @transform_10(%arg0: i32, %arg1: i32) -> (i32, i32, i32) {
    %c0_i32 = arith.constant 0 : i32
    %c0_i32_0 = arith.constant 0 : i32
    %c0_i32_1 = arith.constant 0 : i32
    return %arg1, %c0_i32, %c0_i32_0 : i32, i32, i32
  }
  func.func @transform_11(%arg0: i32, %arg1: i32) -> (i32, i32, i32) {
    %c0_i32 = arith.constant 0 : i32
    %c0_i32_0 = arith.constant 0 : i32
    %c0_i32_1 = arith.constant 0 : i32
    return %arg1, %c0_i32, %c0_i32_0 : i32, i32, i32
  }
  func.func @transform_12(%arg0: i32, %arg1: i32) -> (i32, i32, i32) {
    %c0_i32 = arith.constant 0 : i32
    %c0_i32_0 = arith.constant 0 : i32
    %c0_i32_1 = arith.constant 0 : i32
    return %arg1, %c0_i32, %c0_i32_0 : i32, i32, i32
  }
  func.func @transform_13(%arg0: i32, %arg1: i32) -> (i32, i32, i32) {
    %c0_i32 = arith.constant 0 : i32
    %c0_i32_0 = arith.constant 0 : i32
    %c0_i32_1 = arith.constant 0 : i32
    return %arg1, %c0_i32, %c0_i32_0 : i32, i32, i32
  }
  func.func @transform_14(%arg0: i32, %arg1: i32) -> (i32, i32, i32) {
    %c0_i32 = arith.constant 0 : i32
    %c0_i32_0 = arith.constant 0 : i32
    %c0_i32_1 = arith.constant 0 : i32
    return %arg1, %c0_i32, %c0_i32_0 : i32, i32, i32
  }
  func.func @transform_15(%arg0: i32, %arg1: i32) -> (i32, i32) {
    %c0_i32 = arith.constant 0 : i32
    %c0_i32_0 = arith.constant 0 : i32
    %c0_i32_1 = arith.constant 0 : i32
    return %c0_i32, %c0_i32_0 : i32, i32
  }
  func.func @transform_16(%arg0: i32, %arg1: i32) -> (i32, i32) {
    %c0_i32 = arith.constant 0 : i32
    %c0_i32_0 = arith.constant 0 : i32
    %c0_i32_1 = arith.constant 0 : i32
    return %c0_i32, %c0_i32_0 : i32, i32
  }
  func.func @transform_17(%arg0: i32, %arg1: i32) -> (i32, i32, i32) {
    %c0_i32 = arith.constant 0 : i32
    %c0_i32_0 = arith.constant 0 : i32
    %c0_i32_1 = arith.constant 0 : i32
    return %arg0, %c0_i32, %c0_i32_0 : i32, i32, i32
  }
}

</mosaic_0001>

<bundles_post_ra>
// kernel: tpu_custom_call.1
= control target key start
LH: loop header
LB: loop body
LE: loop exit
PB: predicated region body
PF: predicated region fallthrough
CT: control target
= control target key end

     0   :  { %s4861_s0 = inlined_call_operand.hbm [shape: f32[2,8,64], index: 0, kind: input, shape index: {}]   ;;  %s4862_s1 = inlined_call_operand.hbm [shape: bf16[64,128], index: 1, kind: input, shape index: {}]   ;;  %s4863_s2 = inlined_call_operand.hbm [shape: f32[1,128], index: 2, kind: input, shape index: {}]   ;;  %s4864_s3 = inlined_call_operand.vmem [shape: f32[1,8,128], index: 3, kind: input, shape index: {}]   ;;  %s4865_s4 = inlined_call_operand.vmem [shape: f32[2,1,128], index: 4, kind: input, shape index: {}]   ;;  %s4866_s5 = inlined_call_operand.vmem [shape: f32[2,1,128], index: 5, kind: input, shape index: {}]   ;;  %s4867_s6 = inlined_call_operand.hbm [shape: bf16[2,128,384], index: 6, kind: input, shape index: {}]   ;;  %s4868_s7 = inlined_call_operand.hbm [shape: bf16[2,128,128], index: 7, kind: input, shape index: {}]   ;;  %s4869_s8 = inlined_call_operand.vmem [shape: f32[2,1,128], index: 8, kind: input, shape index: {}]   ;;  %s4870_s9 = inlined_call_operand.vmem [shape: f32[2,1,128], index: 9, kind: input, shape index: {}]   ;;  %s4871_s10 = inlined_call_operand.vmem [shape: f32[2,1,128], index: 10, kind: input, shape index: {}]   ;;  %s4872_s11 = inlined_call_operand.hbm [shape: bf16[2,128,256], index: 11, kind: input, shape index: {}]   ;;  %s4873_s12 = inlined_call_operand.vmem [shape: f32[2,1,256], index: 12, kind: input, shape index: {}]   ;;  %s4874_s13 = inlined_call_operand.hbm [shape: bf16[2,256,128], index: 13, kind: input, shape index: {}]   ;;  %s4875_s14 = inlined_call_operand.vmem [shape: f32[2,1,128], index: 14, kind: input, shape index: {}]   ;;  %s4876_s15 = inlined_call_operand.vmem [shape: f32[1,128], index: 15, kind: input, shape index: {}]   ;;  %s4877_s16 = inlined_call_operand.vmem [shape: f32[1,128], index: 16, kind: input, shape index: {}]   ;;  %s4878_s17 = inlined_call_operand.hbm [shape: f32[2,8,128], index: 17, kind: output, shape index: {}]  }
   0x1   :  { %4903 = sst [smem:[#allocation26_spill]] %s4861_s0 }
   0x2   :  { %4904 = sst [smem:[#allocation27_spill]] %s4862_s1 }
   0x3   :  { %4905 = sst [smem:[#allocation28_spill]] %s4863_s2 }
   0x4   :  { %4906 = sst [smem:[#allocation29_spill]] %s4864_s3 }
   0x5   :  { %4907 = sst [smem:[#allocation30_spill]] %s4865_s4 }
   0x6   :  { %4908 = sst [smem:[#allocation31_spill]] %s4866_s5 }
   0x7   :  { %4909 = sst [smem:[#allocation32_spill]] %s4867_s6 }
   0x8   :  { %4910 = sst [smem:[#allocation33_spill]] %s4868_s7 }
   0x9   :  { %4911 = sst [smem:[#allocation34_spill]] %s4869_s8 }
   0xa   :  { %4912 = sst [smem:[#allocation35_spill]] %s4870_s9 }
   0xb   :  { %4913 = sst [smem:[#allocation36_spill]] %s4871_s10 }
   0xc   :  { %4914 = sst [smem:[#allocation37_spill]] %s4872_s11 }
   0xd   :  { %4915 = sst [smem:[#allocation38_spill]] %s4873_s12 }
   0xe   :  { %4916 = sst [smem:[#allocation39_spill]] %s4874_s13 }
   0xf   :  { %4917 = sst [smem:[#allocation40_spill]] %s4875_s14 }
  0x10   :  { %4918 = sst [smem:[#allocation41_spill]] %s4876_s15 }
  0x11   :  { %4919 = sst [smem:[#allocation42_spill]] %s4877_s16 }
  0x12   :  { %4920 = sst [smem:[#allocation43_spill]] %s4878_s17 }
  0x13   :  { %22 = vsyncpa [#allocation4], 0 }
  0x14   :  { %23 = vsyncpa [#allocation7], 0 }
  0x15   :  { %24 = vsyncpa [#allocation10], 0 }
  0x16   :  { %26 = vsyncpa [#allocation10 + $0x1], 0 }
  0x17   :  { %27 = vsyncpa [#allocation13], 0 }
  0x18   :  { %29 = vsyncpa [#allocation13 + $0x1], 0 }
  0x19   :  { %30 = vsyncpa [#allocation5], 0  ;;  %s4113_s24 = smov 0   ;;  %s4115_s25 = smov 0  }
  0x1a   :  { %s4117_s26 = smov 0   ;;  %s4119_s27 = smov 0  }
  0x1b   :  { %s4121_s28 = smov 0   ;;  %s4123_s29 = smov 0  }
  0x1c LB: > { %4921 = sst [smem:[#allocation21_spill]] %s3985_s26  ;;  %s4142_s0 = sadd.s32 4294967295, %s3997_s29   ;;  %s3997_s29 = sphi %s4123_s29, %s36_s29   ;;  %s3993_s28 = sphi %s4121_s28, %s4988_s28   ;;  %s3989_s27 = sphi %s4119_s27, %s4987_s27   ;;  %s3985_s26 = sphi %s4117_s26, %s4983_s26   ;;  %s3981_s25 = sphi %s4115_s25, %s4986_s25   ;;  %s3977_s24 = sphi %s4113_s24, %s4985_s24  }
  0x1d   : > { %4922 = sst [smem:[#allocation22_spill]] %s3989_s27  ;;  %p203_p0 = scmp.ne.s32.totalorder %s3985_s26, %s3981_s25 }
  0x1e   : > { %4923 = sst [smem:[#allocation23_spill]] %s3997_s29  ;;  %p204_p1 = scmp.eq.s32.totalorder %s3997_s29, 0 }
  0x1f   : > { %p209_p2 = scmp.ne.s32.totalorder %s3981_s25, %s3977_s24  ;;  %p4882_p3 = scmp.eq.s32.totalorder %s4142_s0, 0 }
  0x20   : > { %p4150_p4 = por %p204_p1, %p203_p0  ;;  %p3066_p5 = scmp.ge.s32.totalorder %s3997_s29, 1 }
  0x21   : > { %p4157_p6 = por %p4882_p3, %p209_p2  ;;  %p496_p7 = scmp.lt.s32.totalorder %s3997_s29, 3 }
  0x22   : > { %s4924_s18 = scalar_select %p4150_p4, 1, 0 }
  0x23   : > { %s4925_s19 = scalar_select %p4157_p6, 1, 0 }
  0x24   : > { %p4162_p8 = pnand %p3066_p5, %p496_p7  ;;  %s3999_s20 = smov [#allocation6]  }
  0x25   : > { %s524_s21 = sshll.u32 %s3999_s20, 4  ;;  %s45_s23 = sadd.s32 1, %s3993_s28  ;;  %s525_s21 = int_to_ptr.vmem [resolvable:$true] %s524_s21 }
  0x26   : > { %s4926_s1 = scalar_select %p4162_p8, 1, 0 }
  0x27   : > { %p3463_p9 = pneg %p4162_p8  ;;  %p4176_p12 = scmp.ge.s32.totalorder %s45_s23, 2 }
  0x28   : > { %s4929_s16 = sld [smem:[#allocation27_spill]] }
  0x29   : > { %p4170_p10 = pnand %p3463_p9, %p4882_p3 }
  0x2a   : > { %s4928_s24 = scalar_select %p4176_p12, 1, 0 }
  0x2b   : > { %s4927_s22 = scalar_select %p4170_p10, 1, 0 }
  0x2c   : > { %p4188_p0 = pneg %p4170_p10 }
  0x2e   : > { %s3701_s15 = scalar_lea.hbm %s4929_s16, 512 }
  0x2f   : > { %p3702_p13 = scmp.ne.s32.totalorder %s4929_s16, %s3701_s15  ;;  %p3708_p5 = scmp.lt.u32.totalorder %s3701_s15, %s4929_s16 }
  0x30   : > { %s4930_s14 = scalar_select %p4188_p0, 1, 0 }
  0x31   : > { %p3704_p1 = pnand %p4188_p0, %p3702_p13 }
  0x33   : > { %p3705_p2 = pneg %p3704_p1 }
  0x35   : > { %p3710_p7 = pnand %p3708_p5, %p3705_p2 }
  0x37   : > { %3713 = shalt.err (!%p3710_p7)
}
  0x38   : > { %s3714_s17 = scalar_lea.vmem %s525_s21, 512  ;;  %p3722_p6 = scmp.lt.s32.totalorder %s525_s21, %s525_s21 }
  0x39   : > { %p3715_p9 = scmp.ne.s32.totalorder %s525_s21, %s3714_s17  ;;  %p3723_p8 = scmp.lt.s32.totalorder %s3714_s17, %s3714_s17 }
  0x3b   : > { %p3717_p3 = pnand %p3715_p9, %p4188_p0  ;;  %p3724_p4 = por %p3723_p8, %p3722_p6 }
  0x3d   : > { %p3718_p11 = pneg %p3717_p3 }
  0x3f   : > { %p3725_p12 = pnand %p3724_p4, %p3718_p11 }
  0x41   : > { %3728 = shalt.err (!%p3725_p12)
}
  0x42   : > { %s4885_s3 = smov 64   ;;  %s4887_s10 = smov 4  }
  0x43   : > { %3469 = dma.hbm_to_vmem [thread:$0]  (!%p4170_p10), %s4929_s16, 512, %s525_s21, [#allocation7], %s4885_s3, %s4885_s3, %s4887_s10  }
  0x44   : > { %p4931_p3 = scmp.ne.s32.totalorder %s4928_s24, 0  ;;  %s4890_s30 = sand.u32 1, %s3997_s29  }
  0x45   : > { %s4213_s20 = sand.u32 1, %s3985_s26   ;;  %s3437_s8 = smul.u32 3072, %s3993_s28 }
  0x46   : > { %s4990_s23 = smov (%p4931_p3, %s45_s23), 0  ;;  %s3436_s9 = smul.u32 192, %s4213_s20 }
  0x47   : > { %4932 = sst [smem:[#allocation24_spill]] %s4990_s23  ;;  %s193_s17 = ssub.s32 %s3993_s28, %s4990_s23 }
  0x48   : > { %p194_p4 = scmp.eq.s32.totalorder %s193_s17, 0  ;;  %p4933_p6 = scmp.ne.s32.totalorder %s4924_s18, 0 }
  0x49   : > { %p4934_p8 = scmp.lt.s32.totalorder %s3997_s29, 2  ;;  %s4936_s12 = sadd.s32 1, %s3985_s26 }
  0x4a   : > { %s4230_s21 = scalar_select %p194_p4, %s3985_s26, %s4936_s12  }
  0x4b   : > { %p4223_p11 = pnand %p4934_p8, %p4933_p6  ;;  %s4938_s6 = sld [smem:[#allocation32_spill]] }
  0x4c   : > { %4937 = sst [smem:[#allocation25_spill]] %s4230_s21  ;;  %s574_s17 = scalar_lea.vmem [#allocation9], %s3436_s9 }
  0x4d   : > { %s4935_s5 = scalar_select %p4223_p11, 1, 0 }
  0x4e   : > { %s581_s18 = sshll.u32 %s574_s17, 4  ;;  %s4241_s10 = scalar_lea.sflag [#allocation10], %s4890_s30  ;;  %s4237_s18 = int_to_ptr.vmem [resolvable:$true] %s581_s18 }
  0x4f   : > { %p4247_p13 = pneg %p4223_p11 }
  0x51   : > { %s4235_s3 = scalar_lea.hbm %s4938_s6, %s3437_s8  ;;  %s3734_s9 = scalar_lea.hbm %s4938_s6, 6144 }
  0x52   : > { %s3729_s16 = scalar_lea.hbm %s4235_s3, 3072  ;;  %p3735_p5 = scmp.lt.u32.totalorder %s4235_s3, %s4938_s6 }
  0x53   : > { %p3730_p12 = scmp.ne.s32.totalorder %s4235_s3, %s3729_s16  ;;  %p3736_p7 = scmp.lt.u32.totalorder %s3734_s9, %s3729_s16 }
  0x54   : > { %p3738_p3 = scmp.lt.u32.totalorder %s3729_s16, %s4235_s3 }
  0x55   : > { %p3732_p1 = pnand %p4247_p13, %p3730_p12  ;;  %p3737_p9 = por %p3736_p7, %p3735_p5 }
  0x57   : > { %p3733_p2 = pneg %p3732_p1  ;;  %p3739_p4 = por %p3738_p3, %p3737_p9 }
  0x59   : > { %p3740_p6 = pnand %p3739_p4, %p3733_p2 }
  0x5b   : > { %3743 = shalt.err (!%p3740_p6)
}
  0x5c   : > { %s3744_s30 = scalar_lea.vmem %s4237_s18, 3072  ;;  %s4002_s8 = smov [#allocation9]  }
  0x5d   : > { %p3745_p8 = scmp.ne.s32.totalorder %s4237_s18, %s3744_s30  ;;  %s3749_s24 = sshll.u32 %s4002_s8, 4  ;;  %s3750_s24 = int_to_ptr.vmem [resolvable:$false] %s3749_s24 }
  0x5e   : > { %s3751_s15 = scalar_lea.vmem %s3750_s24, 6144  ;;  %p3752_p10 = scmp.lt.s32.totalorder %s4237_s18, %s3750_s24 }
  0x5f   : > { %p3747_p12 = pnand %p3745_p8, %p4247_p13  ;;  %p3753_p0 = scmp.lt.s32.totalorder %s3751_s15, %s3744_s30 }
  0x61   : > { %p3748_p1 = pneg %p3747_p12  ;;  %p3754_p5 = por %p3753_p0, %p3752_p10 }
  0x63   : > { %p3755_p7 = pnand %p3754_p5, %p3748_p1 }
  0x65   : > { %3758 = shalt.err (!%p3755_p7)
}
  0x66   : > { %s4003_s16 = smov 192   ;;  %s4004_s9 = smov 12  }
  0x67   : > { %3476 = dma.hbm_to_vmem [thread:$0]  (!%p4223_p11), %s4235_s3, 3072, %s4237_s18, %s4241_s10, %s4003_s16, %s4003_s16, %s4004_s9  }
  0x68   : > { %s3075_s17 = sshll.u32 %s4213_s20, 7  ;;  %s3194_s8 = sshll.u32 %s3993_s28, 11 }
  0x69   : > { %s4940_s11 = sld [smem:[#allocation37_spill]]  ;;  %s634_s6 = scalar_lea.vmem [#allocation12], %s3075_s17 }
  0x6a   : > { %s641_s23 = sshll.u32 %s634_s6, 4  ;;  %s4941_s21 = sand.u32 1, %s3997_s29   ;;  %s4282_s23 = int_to_ptr.vmem [resolvable:$true] %s641_s23 }
  0x6b   : > { %s4286_s26 = scalar_lea.sflag [#allocation13], %s4941_s21 }
  0x6f   : > { %s4278_s15 = scalar_lea.hbm %s4940_s11, %s3194_s8  ;;  %s3764_s9 = scalar_lea.hbm %s4940_s11, 4096 }
  0x70   : > { %s3759_s3 = scalar_lea.hbm %s4278_s15, 2048  ;;  %p3765_p9 = scmp.lt.u32.totalorder %s4278_s15, %s4940_s11 }
  0x71   : > { %p3760_p10 = scmp.ne.s32.totalorder %s4278_s15, %s3759_s3  ;;  %p3766_p3 = scmp.lt.u32.totalorder %s3764_s9, %s3759_s3 }
  0x72   : > { %p3768_p6 = scmp.lt.u32.totalorder %s3759_s3, %s4278_s15 }
  0x73   : > { %p3762_p0 = pnand %p3760_p10, %p4247_p13  ;;  %p3767_p4 = por %p3766_p3, %p3765_p9 }
  0x75   : > { %p3763_p2 = pneg %p3762_p0  ;;  %p3769_p8 = por %p3768_p6, %p3767_p4 }
  0x77   : > { %p3770_p12 = pnand %p3769_p8, %p3763_p2 }
  0x79   : > { %3773 = shalt.err (!%p3770_p12)
}
  0x7a   : > { %s3774_s6 = scalar_lea.vmem %s4282_s23, 2048  ;;  %s4005_s21 = smov [#allocation12]  }
  0x7b   : > { %p3775_p1 = scmp.ne.s32.totalorder %s4282_s23, %s3774_s6  ;;  %s3779_s18 = sshll.u32 %s4005_s21, 4  ;;  %s3780_s18 = int_to_ptr.vmem [resolvable:$false] %s3779_s18 }
  0x7c   : > { %s3781_s16 = scalar_lea.vmem %s3780_s18, 4096  ;;  %p3782_p10 = scmp.lt.s32.totalorder %s4282_s23, %s3780_s18 }
  0x7d   : > { %p3777_p5 = pnand %p3775_p1, %p4247_p13  ;;  %p3783_p0 = scmp.lt.s32.totalorder %s3781_s16, %s3774_s6 }
  0x7f   : > { %p3778_p7 = pneg %p3777_p5  ;;  %p3784_p9 = por %p3783_p0, %p3782_p10 }
  0x81   : > { %p3785_p3 = pnand %p3784_p9, %p3778_p7 }
  0x83   : > { %3788 = shalt.err (!%p3785_p3)
}
  0x84   : > { %s4899_s3 = smov 128   ;;  %s4900_s9 = smov 8  }
  0x85   : > { %3482 = dma.hbm_to_vmem [thread:$0]  (!%p4223_p11), %s4278_s15, 2048, %s4282_s23, %s4286_s26, %s4899_s3, %s4899_s3, %s4900_s9  }
  0x86   : > { %s4942_s13 = sld [smem:[#allocation39_spill]]  ;;  %s4322_s21 = scalar_lea.vmem [#allocation14], %s3075_s17 }
  0x87   : > { %s4008_s16 = smov [#allocation3]   ;;  %s4009_s29 = smov [#allocation8]  }
  0x88   : > { %s511_s11 = sshll.u32 %s4008_s16, 4  ;;  %s538_s4 = sshll.u32 %s4009_s29, 4  ;;  %s512_s11 = int_to_ptr.vmem [resolvable:$true] %s511_s11  ;;  %s4325_s4 = int_to_ptr.vmem [resolvable:$true] %s538_s4 }
  0x89   : > { %s4943_s15 = sld [smem:[#allocation26_spill]]  ;;  %p4944_p4 = scmp.ne.s32.totalorder %s4930_s14, 0 }
  0x8c   : > { %s4318_s6 = scalar_lea.hbm %s4942_s13, %s3194_s8 }
  0x8f   : > { %s3789_s3 = scalar_lea.hbm %s4943_s15, 256 }
  0x90   : > { %p3790_p2 = scmp.ne.s32.totalorder %s4943_s15, %s3789_s3  ;;  %p3796_p12 = scmp.lt.u32.totalorder %s3789_s3, %s4943_s15 }
  0x92   : > { %p3792_p6 = pnand %p3790_p2, %p4944_p4 }
  0x94   : > { %p3793_p8 = pneg %p3792_p6 }
  0x96   : > { %p3798_p1 = pnand %p3796_p12, %p3793_p8 }
  0x98   : > { %3801 = shalt.err (!%p3798_p1)
}
  0x99   : > { %s3802_s29 = scalar_lea.vmem %s512_s11, 256  ;;  %p3810_p0 = scmp.lt.s32.totalorder %s512_s11, %s512_s11 }
  0x9a   : > { %p3803_p5 = scmp.ne.s32.totalorder %s512_s11, %s3802_s29  ;;  %p3811_p9 = scmp.lt.s32.totalorder %s3802_s29, %s3802_s29 }
  0x9c   : > { %p3805_p7 = pnand %p3803_p5, %p4944_p4  ;;  %p3812_p3 = por %p3811_p9, %p3810_p0 }
  0x9e   : > { %p3806_p10 = pneg %p3805_p7 }
  0xa0   : > { %p3813_p11 = pnand %p3812_p3, %p3806_p10 }
  0xa2   : > { %3816 = shalt.err (!%p3813_p11)
}
  0xa3   : > { %p4945_p2 = scmp.ne.s32.totalorder %s4927_s22, 0  ;;  %s4946_s27 = smov 8  }
  0xa4   : > { %s4947_s9 = smov 128   ;;  %s4948_s2 = sld [smem:[#allocation28_spill]] }
  0xa5   : > { %3466 = dma.hbm_to_vmem [thread:$0]  (!%p4945_p2), %s4943_s15, 256, %s512_s11, [#allocation4], %s4947_s9, %s4947_s9, %s4946_s27  }
  0xaa   : > { %s3817_s30 = scalar_lea.hbm %s4948_s2, 16 }
  0xab   : > { %p3818_p6 = scmp.ne.s32.totalorder %s4948_s2, %s3817_s30  ;;  %p3824_p12 = scmp.lt.u32.totalorder %s3817_s30, %s4948_s2 }
  0xad   : > { %p3820_p11 = pnand %p3818_p6, %p4944_p4 }
  0xaf   : > { %p3821_p8 = pneg %p3820_p11 }
  0xb1   : > { %p3826_p1 = pnand %p3824_p12, %p3821_p8 }
  0xb3   : > { %3829 = shalt.err (!%p3826_p1)
}
  0xb4   : > { %s3830_s11 = scalar_lea.vmem %s4325_s4, 16  ;;  %s3837_s27 = scalar_lea.vmem %s4325_s4, 32 }
  0xb5   : > { %p3831_p5 = scmp.ne.s32.totalorder %s4325_s4, %s3830_s11  ;;  %p3838_p0 = scmp.lt.s32.totalorder %s4325_s4, %s4325_s4 }
  0xb6   : > { %p3839_p9 = scmp.lt.s32.totalorder %s3837_s27, %s3830_s11 }
  0xb7   : > { %p3833_p7 = pnand %p3831_p5, %p4944_p4 }
  0xb8   : > { %p3840_p3 = por %p3839_p9, %p3838_p0 }
  0xb9   : > { %p3834_p10 = pneg %p3833_p7 }
  0xbb   : > { %p3841_p6 = pnand %p3840_p3, %p3834_p10 }
  0xbd   : > { %3844 = shalt.err (!%p3841_p6)
}
  0xbe   : > { %3472 = dma.hbm_to_vmem [thread:$0]  (!%p4945_p2), %s4948_s2, 16, %s4325_s4, [#allocation7]  }
  0xbf   : > { %s3072_s14 = sshll.u32 %s4213_s20, 6  ;;  %s3193_s24 = sshll.u32 %s3993_s28, 10 }
  0xc0   : > { %s4949_s7 = sld [smem:[#allocation33_spill]]  ;;  %s4950_s30 = sshll.u32 %s4322_s21, 4  ;;  %s4381_s30 = int_to_ptr.vmem [resolvable:$true] %s4950_s30 }
  0xc1   : > { %s595_s22 = scalar_lea.vmem [#allocation11], %s3072_s14 }
  0xc2   : > { %s602_s17 = sshll.u32 %s595_s22, 4  ;;  %s4383_s17 = int_to_ptr.vmem [resolvable:$true] %s602_s17 }
  0xc6   : > { %s4377_s23 = scalar_lea.hbm %s4949_s7, %s3193_s24  ;;  %s3850_s29 = scalar_lea.hbm %s4949_s7, 2048 }
  0xc7   : > { %s3845_s8 = scalar_lea.hbm %s4377_s23, 1024  ;;  %p3851_p8 = scmp.lt.u32.totalorder %s4377_s23, %s4949_s7 }
  0xc8   : > { %p3846_p4 = scmp.ne.s32.totalorder %s4377_s23, %s3845_s8  ;;  %p3852_p12 = scmp.lt.u32.totalorder %s3850_s29, %s3845_s8 }
  0xc9   : > { %p3854_p5 = scmp.lt.u32.totalorder %s3845_s8, %s4377_s23 }
  0xca   : > { %p3848_p2 = pnand %p3846_p4, %p4247_p13  ;;  %p3853_p1 = por %p3852_p12, %p3851_p8 }
  0xcc   : > { %p3849_p11 = pneg %p3848_p2  ;;  %p3855_p7 = por %p3854_p5, %p3853_p1 }
  0xce   : > { %p3856_p10 = pnand %p3855_p7, %p3849_p11 }
  0xd0   : > { %3859 = shalt.err (!%p3856_p10)
}
  0xd1   : > { %s3860_s27 = scalar_lea.vmem %s4383_s17, 1024  ;;  %s4010_s18 = smov [#allocation11]  }
  0xd2   : > { %p3861_p0 = scmp.ne.s32.totalorder %s4383_s17, %s3860_s27  ;;  %s3865_s9 = sshll.u32 %s4010_s18, 4  ;;  %s3866_s9 = int_to_ptr.vmem [resolvable:$false] %s3865_s9 }
  0xd3   : > { %s3867_s14 = scalar_lea.vmem %s3866_s9, 2048  ;;  %p3868_p6 = scmp.lt.s32.totalorder %s4383_s17, %s3866_s9 }
  0xd4   : > { %p3863_p9 = pnand %p3861_p0, %p4247_p13  ;;  %p3869_p4 = scmp.lt.s32.totalorder %s3867_s14, %s3860_s27 }
  0xd6   : > { %p3864_p3 = pneg %p3863_p9  ;;  %p3870_p2 = por %p3869_p4, %p3868_p6 }
  0xd8   : > { %p3871_p8 = pnand %p3870_p2, %p3864_p3 }
  0xda   : > { %3874 = shalt.err (!%p3871_p8)
}
  0xdb   : > { %p4951_p11 = scmp.ne.s32.totalorder %s4935_s5, 0  ;;  %s4952_s24 = smov 4  }
  0xdc   : > { %s4953_s3 = smov 64   ;;  %s3875_s16 = scalar_lea.hbm %s4318_s6, 2048 }
  0xdd   : > { %3479 = dma.hbm_to_vmem [thread:$0]  (!%p4951_p11), %s4377_s23, 1024, %s4383_s17, %s4241_s10, %s4953_s3, %s4953_s3, %s4952_s24  }
  0xde   : > { %p3876_p12 = scmp.ne.s32.totalorder %s4318_s6, %s3875_s16  ;;  %s3880_s4 = scalar_lea.hbm %s4942_s13, 4096 }
  0xdf   : > { %p3881_p7 = scmp.lt.u32.totalorder %s4318_s6, %s4942_s13  ;;  %p3882_p10 = scmp.lt.u32.totalorder %s3880_s4, %s3875_s16 }
  0xe0   : > { %p3878_p1 = pnand %p3876_p12, %p4247_p13  ;;  %p3884_p9 = scmp.lt.u32.totalorder %s3875_s16, %s4318_s6 }
  0xe1   : > { %p3883_p0 = por %p3882_p10, %p3881_p7 }
  0xe2   : > { %p3879_p5 = pneg %p3878_p1 }
  0xe3   : > { %p3885_p3 = por %p3884_p9, %p3883_p0 }
  0xe5   : > { %p3886_p6 = pnand %p3885_p3, %p3879_p5 }
  0xe7   : > { %3889 = shalt.err (!%p3886_p6)
}
  0xe8   : > { %s3890_s10 = scalar_lea.vmem %s4381_s30, 2048  ;;  %s4011_s23 = smov [#allocation14]  }
  0xe9   : > { %p3891_p4 = scmp.ne.s32.totalorder %s4381_s30, %s3890_s10  ;;  %s3895_s17 = sshll.u32 %s4011_s23, 4  ;;  %s3896_s17 = int_to_ptr.vmem [resolvable:$false] %s3895_s17 }
  0xea   : > { %s3897_s21 = scalar_lea.vmem %s3896_s17, 4096  ;;  %p3898_p12 = scmp.lt.s32.totalorder %s4381_s30, %s3896_s17 }
  0xeb   : > { %p3893_p2 = pnand %p3891_p4, %p4247_p13  ;;  %p3899_p1 = scmp.lt.s32.totalorder %s3897_s21, %s3890_s10 }
  0xed   : > { %p3894_p8 = pneg %p3893_p2  ;;  %p3900_p7 = por %p3899_p1, %p3898_p12 }
  0xef   : > { %p3901_p10 = pnand %p3900_p7, %p3894_p8 }
  0xf1   : > { %3904 = shalt.err (!%p3901_p10)
}
  0xf2   : > { %3485 = dma.hbm_to_vmem [thread:$0]  (!%p4951_p11), %s4318_s6, 2048, %s4381_s30, %s4286_s26, %s4953_s3, %s4953_s3, %s4952_s24  }
  0xf3   : > { %p4954_p13 = scmp.ne.s32.totalorder %s4926_s1, 0 }
  0xf4   : > { %p4955_p5 = scmp.eq.s32.totalorder (!%p4954_p13), %s4142_s0, 0 }
  0xf5   : > { %687 = sbr.rel (%p4954_p13) target bundleno = 5190 (0x1446), region = 88 }
  0xfc   : > { %3956 = dma.done.wait (%p4955_p5), [#allocation4], 256   ;;  %p4956_p0 = pmov %p4955_p5 }
  0xfe   : > { %3958 = vsyncadd (%p4956_p0), [#allocation4], 4294967040  ;;  %p4957_p9 = pmov %p4956_p0 }
  0xff   : > { %p4958_p3 = pmov %p4956_p0 }
 0x100   : > { %3960 = dma.done.wait (%p4957_p9), [#allocation7], 528  }
 0x101   : > { %3962 = vsyncadd (%p4958_p3), [#allocation7], 4294966768  ;;  %s701_s5 = sand.u32 1, %s4142_s0   ;;  %s703_s26 = sand.u32 1, %s3981_s25  }
 0x102   : > { %s3438_s12 = smul.u32 192, %s703_s26  ;;  %s702_s1 = scalar_lea.sflag [#allocation10], %s701_s5 }
 0x103   : > { %p4959_p11 = scmp.ne.s32.totalorder %s4925_s19, 0 }
 0x104   : > { %s4447_s6 = scalar_lea.vmem [#allocation9], %s3438_s12 }
 0x105   : > { %3964 = dma.done.wait (%p4959_p11), %s702_s1, 4096  }
 0x106   : > { %3966 = vsyncadd (%p4959_p11), %s702_s1, 4294963200  ;;  %s3085_s30 = sshll.u32 %s703_s26, 6  ;;  %s3086_s11 = sshll.u32 %s703_s26, 7 }
 0x107   : > { %s4453_s27 = scalar_lea.vmem [#allocation11], %s3085_s30  ;;  %s720_s18 = scalar_lea.sflag [#allocation13], %s701_s5 }
 0x108   : > { %s4455_s9 = scalar_lea.vmem [#allocation12], %s3086_s11 }
 0x109   : > { %3968 = dma.done.wait (%p4959_p11), %s720_s18, 4096  }
 0x10a   : > { %3970 = vsyncadd (%p4959_p11), %s720_s18, 4294963200  ;;  %s4960_s14 = sld [smem:[#allocation22_spill]]  ;;  %s4963_s17 = sld [smem:[#allocation34_spill]] }
 0x10b   : > { %s4964_s12 = sld [smem:[#allocation35_spill]]  ;;  %s4965_s3 = sld [smem:[#allocation36_spill]] }
 0x10c   : > { %s4966_s22 = sld [smem:[#allocation38_spill]]  ;;  %s4967_s19 = sld [smem:[#allocation40_spill]] }
 0x10d   : > { %s4495_s10 = scalar_lea.vmem [#allocation14], %s3086_s11 }
 0x110   : > { %p816_p6 = scmp.lt.s32.totalorder %s4960_s14, 1  ;;  %p3089_p4 = scmp.ne.s32.totalorder %s4960_s14, 0 }
 0x111   : > { %v3563_v0 = vld [vmem:[#allocation6] sm:$0xff] (!%p3089_p4)   ;;  %v4012_v1 = vmov (!%p3089_p4), 0.0   ;;  %v3564_v2 = vld [vmem:[#allocation6 + $0x8] sm:$0xff] (!%p3089_p4)   ;;  %vm4013_vm0 = vmmov (!%p3089_p4), 0   ;;  %v3565_v3 = vld [vmem:[#allocation6 + $0x10] sm:$0xff] (!%p3089_p4)   ;;  %vm886_vm1 = vcmask (!%p3089_p4), 523264  }
 0x112   : > { %s4463_s24 = scalar_select %p816_p6, %s4960_s14, 1 }
 0x113   : > { %843 = sbr.rel (%p3089_p4) target bundleno = 510 (0x1fe), region = 120  ;;  %3276 = vmatprep.subr.bf16.mxu0 (!%p3089_p4), %v4012_v1  ;;  %3284 = vmatprep.mubr.msk.bf16.mxu0 (!%p3089_p4), %vm4013_vm0, %v4012_v1  ;;  %v3566_v4 = vld [vmem:[#allocation6 + $0x18] sm:$0xff] (!%p3089_p4)   ;;  %v844_v5 = vld [vmem:[#allocation3] sm:$0xff] (!%p3089_p4)  ;;  %v3090_v8 = vld [vmem:[#allocation8] ss:$0 sm:$0xff] (!%p3089_p4)  ;;  %s4968_s13 = sld [smem:[#allocation29_spill]] (!%p3089_p4) }
 0x114   : > { %s824_s21 = scalar_lea.vmem %s4963_s17, %s4463_s24  ;;  %s827_s1 = scalar_lea.vmem %s4964_s12, %s4463_s24  ;;  %3277 = vmatpush3.bf16.msra.mxu0 (!%p3089_p4), %v3563_v0  ;;  %v845_v6 = vld [vmem:[#allocation3 + $0x8] sm:$0xff] (!%p3089_p4) }
 0x115   : > { %s830_s16 = scalar_lea.vmem %s4965_s3, %s4463_s24  ;;  %s3088_s2 = sshll.u32 %s4463_s24, 1  ;;  %3278 = vmatprep.subr.bf16.mxu0 (!%p3089_p4), %v4012_v1  ;;  %v846_v7 = vpack.c.bf16 (!%p3089_p4), %v845_v6, %v844_v5 }
 0x116   : > { %s4489_s8 = scalar_lea.vmem %s4966_s22, %s3088_s2  ;;  %s837_s29 = scalar_lea.vmem %s4967_s19, %s4463_s24 }
 0x118   : > { %3279 = vmatpush3.bf16.msra.mxu0 (!%p3089_p4), %v3564_v2 }
 0x119   : > { %3280 = vmatprep.subr.bf16.mxu0 (!%p3089_p4), %v4012_v1  ;;  %v931_v10 = vld [vmem:[%s4968_s13] sm:$0xff] (!%p3089_p4) }
 0x11c   : > { %3281 = vmatpush3.bf16.msra.mxu0 %v3565_v3 }
 0x11d   : > { %3282 = vmatprep.subr.bf16.mxu0 %v4012_v1 }
 0x120   : > { %3283 = vmatpush3.bf16.msra.mxu0 %v3566_v4 }
 0x123   : > { %3285 = vmatmul.mubr.msk.bf16.vlgmr.msra.gmra.mrb[0].mxu0 %vm886_vm1, %v846_v7 }
 0x1f6   : > { %v924_v9 = vpop.f32.mrb[0].mxu0 }
 0x1f7   : > { %v925_v11 = vadd.f32 %v3090_v8, %v924_v9  ;;  %v3286_v12 = vpop.f32.mrb[1].mxu0 }
 0x1f8   : > { %v927_v13 = vpop.f32.mrb[2].mxu0 }
 0x1f9   : > { %v932_v14 = vadd.f32 %v931_v10, %v925_v11  ;;  %v928_v15 = vadd.f32 %v3090_v8, %v927_v13  ;;  %v3287_v16 = vpop.f32.mrb[3].mxu0 }
 0x1fb   : > { %934 = vst [vmem:[#allocation2] sm:$0xff] %v932_v14  ;;  %v933_v17 = vadd.f32 %v931_v10, %v928_v15 }
 0x1fd   : > { %935 = vst [vmem:[#allocation2 + $0x8] sm:$0xff] %v933_v17 }
 0x1fe PF: > { %v3567_v20 = vld [vmem:[%s4447_s6 + $0x4] ss:$12 sps:$4 sm:$0xff]   ;;  %v3569_v21 = vld [vmem:[%s4447_s6] ss:$12 sps:$4 sm:$0xff]   ;;  %v4014_v22 = vmov 0.0   ;;  %v4015_v48 = vmov 0  }
 0x1ff   : > { %3288 = vmatprep.subr.bf16.mxu1 %v4014_v22  ;;  %v3570_v23 = vld [vmem:[%s4447_s6 + $0x8] ss:$12 sps:$4 sm:$0xff]   ;;  %1140 = vmatprep.subr.bf16.mxu0 %v3567_v20  ;;  %v3573_v33 = vld [vmem:[%s4447_s6 + $0x18] ss:$12 sps:$4 sm:$0xff]   ;;  %v3574_v34 = vld [vmem:[%s4447_s6 + $0x20] ss:$12 sps:$4 sm:$0xff]  }
 0x200   : > { %v3571_v24 = vld [vmem:[%s4447_s6 + $0x1c] ss:$12 sps:$4 sm:$0xff]   ;;  %1141 = vmatpush1.bf16.msra.mxu0 %v3569_v21  ;;  %3289 = vmatpush3.bf16.msra.mxu1 %v3570_v23  ;;  %v3575_v35 = vld [vmem:[%s4447_s6 + $0x34] ss:$12 sps:$4 sm:$0xff]   ;;  %v3578_v37 = vld [vmem:[%s4447_s6 + $0x38] ss:$12 sps:$4 sm:$0xff]  }
 0x201   : > { %1142 = vmatprep.subr.bf16.mxu0 %v3571_v24  ;;  %3290 = vmatprep.subr.bf16.mxu1 %v4014_v22  ;;  %v3577_v36 = vld [vmem:[%s4447_s6 + $0x30] ss:$12 sps:$4 sm:$0xff]   ;;  %v3579_v38 = vld [vmem:[%s4447_s6 + $0x4c] ss:$12 sps:$4 sm:$0xff]   ;;  %v3581_v39 = vld [vmem:[%s4447_s6 + $0x48] ss:$12 sps:$4 sm:$0xff]  }
 0x202   : > { %v936_v18 = vld [vmem:[#allocation2] sm:$0xff]  ;;  %v3586_v43 = vld [vmem:[%s4447_s6 + $0x68] ss:$12 sps:$4 sm:$0xff]   ;;  %1172 = vmatprep.mubr.bf16.mxu0 %v4015_v48  ;;  %vm4016_vm2 = vmmov 0   ;;  %v3595_v51 = vld [vmem:[%s4447_s6 + $0xac] ss:$12 sps:$4 sm:$0xff]  }
 0x203   : > { %940 = vadd.xlane.f32.xlu0 %v936_v18  ;;  %v3582_v40 = vld [vmem:[%s4447_s6 + $0x50] ss:$12 sps:$4 sm:$0xff]   ;;  %v3585_v42 = vld [vmem:[%s4447_s6 + $0x60] ss:$12 sps:$4 sm:$0xff]   ;;  %v3589_v45 = vld [vmem:[%s4447_s6 + $0x78] ss:$12 sps:$4 sm:$0xff]   ;;  %3304 = vmatprep.mubr.msk.bf16.mxu1 %vm4016_vm2, %v4014_v22 }
 0x204   : > { %v937_v19 = vld [vmem:[#allocation2 + $0x8] sm:$0xff]  ;;  %1143 = vmatpush1.bf16.msra.mxu0 %v3573_v33  ;;  %3291 = vmatpush3.bf16.msra.mxu1 %v3574_v34  ;;  %v3591_v47 = vld [vmem:[%s4447_s6 + $0x94] ss:$12 sps:$4 sm:$0xff]   ;;  %v3593_v49 = vld [vmem:[%s4447_s6 + $0x90] ss:$12 sps:$4 sm:$0xff]   ;;  %s4969_s14 = sld [smem:[#allocation30_spill]] }
 0x205   : > { %3292 = vmatprep.subr.bf16.mxu1 %v4014_v22  ;;  %1144 = vmatprep.subr.bf16.mxu0 %v3575_v35  ;;  %v3583_v41 = vld [vmem:[%s4447_s6 + $0x64] ss:$12 sps:$4 sm:$0xff]   ;;  %v3587_v44 = vld [vmem:[%s4447_s6 + $0x7c] ss:$12 sps:$4 sm:$0xff]   ;;  %v3590_v46 = vld [vmem:[%s4447_s6 + $0x80] ss:$12 sps:$4 sm:$0xff]  }
 0x206   : > { %v3594_v50 = vld [vmem:[%s4447_s6 + $0x98] ss:$12 sps:$4 sm:$0xff]   ;;  %v3597_v52 = vld [vmem:[%s4447_s6 + $0xa8] ss:$12 sps:$4 sm:$0xff]   ;;  %v3598_v53 = vld [vmem:[%s4447_s6 + $0xb0] ss:$12 sps:$4 sm:$0xff]  }
 0x207   : > { %942 = vadd.xlane.f32.xlu0 %v937_v19  ;;  %s4971_s26 = sld [smem:[#allocation31_spill]]  ;;  %vm1244_vm3 = vcmask 261120   ;;  %vm1369_vm4 = vcmask 1043456   ;;  %vm1339_vm5 = vcmask 64512   ;;  %s4017_s30 = smov 96  }
 0x208   : > { %1145 = vmatpush1.bf16.msra.mxu0 %v3577_v36  ;;  %3293 = vmatpush3.bf16.msra.mxu1 %v3578_v37  ;;  %s4018_s18 = smov 64   ;;  %s4019_s3 = smov 32  }
 0x209   : > { %3294 = vmatprep.subr.bf16.mxu1 %v4014_v22  ;;  %1146 = vmatprep.subr.bf16.mxu0 %v3579_v38 }
 0x20a   : > { %s4970_s23 = scalar_lea.vmem %s4969_s14, %s4463_s24 }
 0x20b   : > { %v3096_v62 = vld [vmem:[%s4970_s23] ss:$0 sm:$0xff] }
 0x20c   : > { %1147 = vmatpush1.bf16.msra.mxu0 %v3581_v39  ;;  %3295 = vmatpush3.bf16.msra.mxu1 %v3582_v40 }
 0x20d   : > { %3296 = vmatprep.subr.bf16.mxu1 %v4014_v22  ;;  %1148 = vmatprep.subr.bf16.mxu0 %v3583_v41  ;;  %s4972_s12 = scalar_lea.vmem %s4971_s26, %s4463_s24 }
 0x20e   : > { %v3097_v2 = vld [vmem:[%s4972_s12] ss:$0 sm:$0xff] }
 0x210   : > { %1149 = vmatpush1.bf16.msra.mxu0 %v3585_v42  ;;  %3297 = vmatpush3.bf16.msra.mxu1 %v3586_v43 }
 0x211   : > { %1150 = vmatprep.subr.bf16.mxu0 %v3587_v44  ;;  %3298 = vmatprep.subr.bf16.mxu1 %v4014_v22 }
 0x214   : > { %1151 = vmatpush1.bf16.msra.mxu0 %v3589_v45  ;;  %3299 = vmatpush3.bf16.msra.mxu1 %v3590_v46 }
 0x215   : > { %1152 = vmatprep.subr.bf16.mxu0 %v3591_v47  ;;  %3300 = vmatprep.subr.bf16.mxu1 %v4014_v22 }
 0x218   : > { %1153 = vmatpush1.bf16.msra.mxu0 %v3593_v49  ;;  %3301 = vmatpush3.bf16.msra.mxu1 %v3594_v50 }
 0x219   : > { %1154 = vmatprep.subr.bf16.mxu0 %v3595_v51  ;;  %3302 = vmatprep.subr.bf16.mxu1 %v4014_v22 }
 0x21c   : > { %1155 = vmatpush1.bf16.msra.mxu0 %v3597_v52  ;;  %3303 = vmatpush3.bf16.msra.mxu1 %v3598_v53 }
 0x21d   : > { %3308 = vmatprep.subr.bf16.mxu0 %v4014_v22  ;;  %3314 = vmatprep.subr.bf16.mxu1 %v4014_v22 }
 0x290   : > { %v941_v25 = vpop.xlane.xlu0 %940 }
 0x291   : > { %v945_v26 = vmul.f32 0.0078125, %v941_v25 }
 0x293   : > { %v4507_v27 = vsub.f32 %v936_v18, %v945_v26 }
 0x294   : > { %v943_v28 = vpop.xlane.xlu0 %942 }
 0x295   : > { %v946_v29 = vmul.f32 0.0078125, %v943_v28  ;;  %v949_v30 = vmul.f32 %v4507_v27, %v4507_v27 }
 0x297   : > { %v4511_v31 = vsub.f32 %v937_v19, %v946_v29  ;;  %951 = vadd.xlane.f32.xlu1 %v949_v30 }
 0x299   : > { %v950_v32 = vmul.f32 %v4511_v31, %v4511_v31 }
 0x29b   : > { %953 = vadd.xlane.f32.xlu1 %v950_v32 }
 0x324   : > { %v952_v54 = vpop.xlane.xlu1 %951 }
 0x325   : > { %v955_v55 = vmul.f32 0.0078125, %v952_v54 }
 0x327   : > { %v957_v56 = vadd.f32 1e-05, %v955_v55 }
 0x328   : > { %v954_v57 = vpop.xlane.xlu1 %953 }
 0x329   : > { %3647 = vrsqrt.f32 %v957_v56  ;;  %v956_v58 = vmul.f32 0.0078125, %v954_v57 }
 0x32b   : > { %v958_v59 = vadd.f32 1e-05, %v956_v58 }
 0x32d   : > { %3649 = vrsqrt.f32 %v958_v59 }
 0x333   : > { %v3648_v60 = vpop.eup %3647 }
 0x334   : > { %v961_v61 = vmul.f32 %v3648_v60, %v4507_v27 }
 0x336   : > { %v969_v1 = vmul.f32 %v3096_v62, %v961_v61 }
 0x337   : > { %v3650_v63 = vpop.eup %3649 }
 0x338   : > { %v962_v0 = vmul.f32 %v3650_v63, %v4511_v31  ;;  %v977_v4 = vadd.f32 %v3097_v2, %v969_v1 }
 0x33a   : > { %v970_v3 = vmul.f32 %v3096_v62, %v962_v0 }
 0x33c   : > { %v978_v5 = vadd.f32 %v3097_v2, %v970_v3 }
 0x33e   : > { %v979_v6 = vpack.c.bf16 %v978_v5, %v977_v4 }
 0x340   : > { %1173 = vmatmul.mubr.bf16.vlgmr.msra.gmra.mrb[0].mxu0 %v979_v6  ;;  %3305 = vmatmul.mubr.bf16.vlgmr.msra.gmra.mrb[0].mxu1 %v979_v6 }
 0x341   : > { %3310 = vmatprep.mubr.msk.bf16.mxu0 %vm4016_vm2, %v4014_v22  ;;  %3316 = vmatprep.mubr.msk.bf16.mxu1 %vm4016_vm2, %v4014_v22 }
 0x413   : > { %v1174_v7 = vpop.f32.mrb[0].mxu0  ;;  %v1217_v8 = vpop.f32.mrb[0].mxu1 }
 0x414   : > { %v1176_v9 = vpop.f32.mrb[1].mxu0  ;;  %v3306_v10 = vpop.f32.mrb[1].mxu1  ;;  %v4571_v19 = vpack.c.bf16 %v1217_v8, %v1217_v8  ;;  %v4574_v20 = vpack.c.bf16 %v1174_v7, %v1174_v7 }
 0x415   : > { %v4562_v11 = vpack.c.bf16 %v1176_v9, %v1176_v9  ;;  %v1178_v12 = vpop.f32.mrb[2].mxu0  ;;  %v1220_v13 = vpop.f32.mrb[2].mxu1 }
 0x416   : > { %v1180_v14 = vpop.f32.mrb[3].mxu0  ;;  %v3307_v15 = vpop.f32.mrb[3].mxu1  ;;  %v4576_v21 = vpack.c.bf16 %v1220_v13, %v1220_v13  ;;  %v4578_v23 = vpack.c.bf16 %v1178_v12, %v1178_v12  ;;  %v1371_v24 = vsel %vm1369_vm4, %v4571_v19, 0 }
 0x417   : > { %v4564_v16 = vpack.c.bf16 %v1180_v14, %v1180_v14  ;;  %v1249_v17 = vsel %vm1244_vm3, %v4562_v11, 0 }
 0x418   : > { %3309 = vmatpush3.bf16.xpose.msra.mxu0 %v1249_v17  ;;  %v1417_v25 = vsel %vm1369_vm4, %v4576_v21, 0 }
 0x419   : > { %v1295_v18 = vsel %vm1244_vm3, %v4564_v16, 0  ;;  %3320 = vmatprep.subr.bf16.mxu0 %v4014_v22 }
 0x41a   : > { %3315 = vmatpush3.bf16.xpose.msra.mxu1 %v1295_v18 }
 0x41b   : > { %3326 = vmatprep.subr.bf16.mxu1 %v4014_v22 }
 0x41f   : > { %3311 = vmatmul.mubr.msk.bf16.vlgmr.msra.gmra.mrb[4].mxu0 %vm1244_vm3, %v4574_v20 }
 0x420   : > { %3321 = vmatpush3.bf16.msra.mxu0 %v1371_v24  ;;  %3322 = vmatprep.mubr.msk.bf16.mxu0 %vm4016_vm2, %v4014_v22 }
 0x421   : > { %3317 = vmatmul.mubr.msk.bf16.vlgmr.msra.gmra.mrb[4].mxu1 %vm1244_vm3, %v4578_v23  ;;  %3332 = vmatprep.subr.bf16.mxu0 %v4014_v22 }
 0x422   : > { %3327 = vmatpush3.bf16.msra.mxu1 %v1417_v25  ;;  %3328 = vmatprep.mubr.msk.bf16.mxu1 %vm4016_vm2, %v4014_v22 }
 0x423   : > { %3338 = vmatprep.subr.bf16.mxu1 %v4014_v22 }
 0x4f2   : > { %v1285_v26 = vpop.f32.mrb[4].mxu0 }
 0x4f3   : > { %v1337_v27 = vmul.f32 0.17677669, %v1285_v26  ;;  %v3312_v28 = vpop.f32.mrb[5].mxu0 }
 0x4f4   : > { %v1288_v29 = vpop.f32.mrb[6].mxu0  ;;  %v1331_v30 = vpop.f32.mrb[4].mxu1 }
 0x4f5   : > { %v1338_v31 = vmul.f32 0.17677669, %v1331_v30  ;;  %v3313_v32 = vpop.f32.mrb[7].mxu0  ;;  %v3318_v33 = vpop.f32.mrb[5].mxu1  ;;  %v1340_v34 = vsel %vm1339_vm5, %v1337_v27, -inf }
 0x4f6   : > { %1341 = vmax.xlane.f32.xlu0 %v1340_v34  ;;  %v1334_v35 = vpop.f32.mrb[6].mxu1 }
 0x4f7   : > { %v3319_v36 = vpop.f32.mrb[7].mxu1  ;;  %v1343_v37 = vsel %vm1339_vm5, %v1338_v31, -inf }
 0x4f8   : > { %1344 = vmax.xlane.f32.xlu1 %v1343_v37 }
 0x509   : > { %1516 = vrot.lane.b32.xlu1 %v4564_v16, %s4017_s30 }
 0x583   : > { %v1342_v38 = vpop.xlane.xlu0 %1341 }
 0x584   : > { %v1346_v39 = vsub.f32 %v1337_v27, %v1342_v38 }
 0x585   : > { %v1345_v40 = vpop.xlane.xlu1 %1344 }
 0x586   : > { %v1348_v41 = vmul.f32 1.442695, %v1346_v39  ;;  %v1347_v42 = vsub.f32 %v1338_v31, %v1345_v40 }
 0x588   : > { %3651 = vpow2.f32 %v1348_v41  ;;  %v1350_v43 = vmul.f32 1.442695, %v1347_v42 }
 0x589   : > { %v1517_v49 = vpop.permute.xlu1 %1516 }
 0x58a   : > { %3653 = vpow2.f32 %v1350_v43  ;;  %v1522_v60 = vsel %vm1244_vm3, %v1517_v49, 0 }
 0x592   : > { %v3652_v44 = vpop.eup %3651 }
 0x593   : > { %v1352_v45 = vsel %vm1339_vm5, %v3652_v44, 0.0 }
 0x594   : > { %v3654_v46 = vpop.eup %3653  ;;  %1353 = vadd.xlane.f32.xlu0 %v1352_v45  ;;  %v3601_v45 = vld [vmem:[%s4453_s27 + $0x10] sm:$0xff]  }
 0x595   : > { %v1355_v47 = vsel %vm1339_vm5, %v3654_v46, 0.0 }
 0x596   : > { %1356 = vadd.xlane.f32.xlu1 %v1355_v47 }
 0x5a7   : > { %1461 = vrot.lane.b32.xlu1 %v4574_v20, %s4017_s30 }
 0x5aa   : > { %1464 = vrot.lane.b32.xlu0 %v4562_v11, %s4017_s30 }
 0x5ab   : > { %1513 = vrot.lane.b32.xlu1 %v4578_v23, %s4017_s30 }
 0x621   : > { %v1354_v50 = vpop.xlane.xlu0 %1353 }
 0x622   : > { %3655 = vrcp.f32 %v1354_v50  ;;  %v3599_v50 = vld [vmem:[%s4453_s27] sm:$0xff]  }
 0x623   : > { %v1357_v51 = vpop.xlane.xlu1 %1356 }
 0x624   : > { %3657 = vrcp.f32 %v1357_v51 }
 0x625   : > { %v1465_v55 = vpop.permute.xlu0 %1464 }
 0x626   : > { %v1470_v58 = vsel %vm1244_vm3, %v1465_v55, 0 }
 0x627   : > { %v1462_v61 = vpop.permute.xlu1 %1461 }
 0x62b   : > { %v1514_v62 = vpop.permute.xlu1 %1513 }
 0x62c   : > { %v3656_v52 = vpop.eup %3655 }
 0x62d   : > { %v1360_v53 = vmul.f32 %v3656_v52, %v3652_v44  ;;  %v3602_v52 = vld [vmem:[%s4453_s27 + $0x18] sm:$0xff]  }
 0x62e   : > { %v3658_v54 = vpop.eup %3657 }
 0x62f   : > { %v1361_v56 = vmul.f32 %v3658_v54, %v3654_v46  ;;  %v1362_v57 = vpack.c.bf16 %v1360_v53, %v1360_v53  ;;  %v3600_v53 = vld [vmem:[%s4453_s27 + $0x8] sm:$0xff]  }
 0x631   : > { %3323 = vmatmul.mubr.msk.bf16.vlgmr.msra.gmra.mrb[8].mxu0 %vm1339_vm5, %v1362_v57  ;;  %v1363_v59 = vpack.c.bf16 %v1361_v56, %v1361_v56 }
 0x632   : > { %3333 = vmatpush3.bf16.xpose.msra.mxu0 %v1470_v58  ;;  %3334 = vmatprep.mubr.msk.bf16.mxu0 %vm4016_vm2, %v4014_v22 }
 0x633   : > { %3329 = vmatmul.mubr.msk.bf16.vlgmr.msra.gmra.mrb[8].mxu1 %vm1339_vm5, %v1363_v59  ;;  %3344 = vmatprep.subr.bf16.mxu0 %v4014_v22 }
 0x634   : > { %3339 = vmatpush3.bf16.xpose.msra.mxu1 %v1522_v60  ;;  %3340 = vmatprep.mubr.msk.bf16.mxu1 %vm4016_vm2, %v4014_v22 }
 0x635   : > { %3350 = vmatprep.subr.bf16.mxu1 %v4014_v22 }
 0x639   : > { %3335 = vmatmul.mubr.msk.bf16.vlgmr.msra.gmra.mrb[12].mxu0 %vm1244_vm3, %v1462_v61 }
 0x63a   : > { %3346 = vmatprep.mubr.msk.bf16.mxu0 %vm4016_vm2, %v4014_v22 }
 0x63b   : > { %3341 = vmatmul.mubr.msk.bf16.vlgmr.msra.gmra.mrb[12].mxu1 %vm1244_vm3, %v1514_v62 }
 0x63c   : > { %3352 = vmatprep.mubr.msk.bf16.mxu1 %vm4016_vm2, %v4014_v22 }
 0x704   : > { %v4622_v63 = vpop.f32.mrb[8].mxu0 }
 0x705   : > { %v3324_v0 = vpop.f32.mrb[9].mxu0 }
 0x706   : > { %v1410_v1 = vpop.f32.mrb[10].mxu0  ;;  %v4624_v2 = vpop.f32.mrb[8].mxu1 }
 0x707   : > { %v1459_v3 = vpack.c.bf16 %v4624_v2, %v4622_v63  ;;  %v3325_v4 = vpop.f32.mrb[11].mxu0  ;;  %v3330_v5 = vpop.f32.mrb[9].mxu1 }
 0x708   : > { %v1456_v6 = vpop.f32.mrb[10].mxu1 }
 0x709   : > { %v3331_v7 = vpop.f32.mrb[11].mxu1 }
 0x70c   : > { %v1506_v8 = vpop.f32.mrb[12].mxu0 }
 0x70d   : > { %v1564_v9 = vmul.f32 0.17677669, %v1506_v8  ;;  %v3336_v10 = vpop.f32.mrb[13].mxu0 }
 0x70e   : > { %v1509_v12 = vpop.f32.mrb[14].mxu0  ;;  %v1558_v13 = vpop.f32.mrb[12].mxu1 }
 0x70f   : > { %v1565_v14 = vmul.f32 0.17677669, %v1558_v13  ;;  %v3337_v15 = vpop.f32.mrb[15].mxu0  ;;  %v3342_v17 = vpop.f32.mrb[13].mxu1  ;;  %v1566_v18 = vsel %vm1339_vm5, %v1564_v9, -inf }
 0x710   : > { %1567 = vmax.xlane.f32.xlu0 %v1566_v18  ;;  %v1561_v24 = vpop.f32.mrb[14].mxu1 }
 0x711   : > { %v3343_v25 = vpop.f32.mrb[15].mxu1  ;;  %v1569_v26 = vsel %vm1339_vm5, %v1565_v14, -inf }
 0x712   : > { %1570 = vmax.xlane.f32.xlu1 %v1569_v26 }
 0x723   : > { %1640 = vrot.lane.b32.xlu1 %v4576_v21, %s4017_s30 }
 0x727   : > { %1803 = vrot.lane.b32.xlu1 %v4562_v11, %s4018_s18 }
 0x72b   : > { %1853 = vrot.lane.b32.xlu1 %v4564_v16, %s4018_s18 }
 0x72f   : > { %1851 = vrot.lane.b32.xlu1 %v4578_v23, %s4018_s18 }
 0x79d   : > { %v1568_v27 = vpop.xlane.xlu0 %1567 }
 0x79e   : > { %v1572_v28 = vsub.f32 %v1564_v9, %v1568_v27 }
 0x79f   : > { %v1571_v29 = vpop.xlane.xlu1 %1570 }
 0x7a0   : > { %v1574_v30 = vmul.f32 1.442695, %v1572_v28  ;;  %v1573_v31 = vsub.f32 %v1565_v14, %v1571_v29 }
 0x7a2   : > { %3659 = vpow2.f32 %v1574_v30  ;;  %v1576_v32 = vmul.f32 1.442695, %v1573_v31 }
 0x7a3   : > { %v1641_v33 = vpop.permute.xlu1 %1640 }
 0x7a4   : > { %3661 = vpow2.f32 %v1576_v32  ;;  %v1646_v34 = vsel %vm1369_vm4, %v1641_v33, 0 }
 0x7a5   : > { %3351 = vmatpush3.bf16.msra.mxu1 %v1646_v34 }
 0x7a6   : > { %3364 = vmatprep.subr.bf16.mxu1 %v4014_v22 }
 0x7a7   : > { %v1804_v54 = vpop.permute.xlu1 %1803 }
 0x7a8   : > { %v1809_v2 = vsel %vm1244_vm3, %v1804_v54, 0 }
 0x7ab   : > { %v1854_v55 = vpop.permute.xlu1 %1853 }
 0x7ac   : > { %v3660_v35 = vpop.eup %3659  ;;  %v1859_v56 = vsel %vm1244_vm3, %v1854_v55, 0 }
 0x7ad   : > { %v1578_v36 = vsel %vm1339_vm5, %v3660_v35, 0.0 }
 0x7ae   : > { %v3662_v37 = vpop.eup %3661  ;;  %1579 = vadd.xlane.f32.xlu0 %v1578_v36 }
 0x7af   : > { %v1581_v38 = vsel %vm1339_vm5, %v3662_v37, 0.0  ;;  %v1852_v57 = vpop.permute.xlu1 %1851 }
 0x7b2   : > { %1582 = vadd.xlane.f32.xlu0 %v1581_v38 }
 0x7c8   : > { %1591 = vrot.lane.b32.xlu0 %v4571_v19, %s4017_s30 }
 0x7cc   : > { %1801 = vrot.lane.b32.xlu0 %v4574_v20, %s4018_s18 }
 0x83b   : > { %v1580_v39 = vpop.xlane.xlu0 %1579 }
 0x83c   : > { %3663 = vrcp.f32 %v1580_v39 }
 0x83f   : > { %v1583_v40 = vpop.xlane.xlu0 %1582 }
 0x840   : > { %3665 = vrcp.f32 %v1583_v40 }
 0x843   : > { %v1592_v41 = vpop.permute.xlu0 %1591 }
 0x844   : > { %v1597_v42 = vsel %vm1369_vm4, %v1592_v41, 0 }
 0x845   : > { %3345 = vmatpush3.bf16.msra.mxu0 %v1597_v42 }
 0x846   : > { %v3664_v43 = vpop.eup %3663  ;;  %3356 = vmatprep.subr.bf16.mxu0 %v4014_v22 }
 0x847   : > { %v1586_v44 = vmul.f32 %v3664_v43, %v3660_v35  ;;  %v1802_v6 = vpop.permute.xlu0 %1801 }
 0x849   : > { %v1588_v46 = vpack.c.bf16 %v1586_v44, %v1586_v44 }
 0x84a   : > { %v3666_v47 = vpop.eup %3665 }
 0x84b   : > { %v1587_v49 = vmul.f32 %v3666_v47, %v3662_v37  ;;  %3347 = vmatmul.mubr.msk.bf16.vlgmr.msra.gmra.mrb[16].mxu0 %vm1339_vm5, %v1588_v46 }
 0x84c   : > { %3357 = vmatpush3.bf16.msra.mxu0 %v3601_v45  ;;  %3360 = vmatprep.mubr.msk.bf16.mxu0 %vm4016_vm2, %v4014_v22 }
 0x84d   : > { %v1589_v51 = vpack.c.bf16 %v1587_v49, %v1587_v49  ;;  %3358 = vmatprep.subr.bf16.mxu0 %v4014_v22 }
 0x84f   : > { %3353 = vmatmul.mubr.msk.bf16.vlgmr.msra.gmra.mrb[16].mxu1 %vm1339_vm5, %v1589_v51 }
 0x850   : > { %3365 = vmatpush3.bf16.msra.mxu1 %v3599_v50  ;;  %3368 = vmatprep.mubr.msk.bf16.mxu1 %vm4016_vm2, %v4014_v22 }
 0x851   : > { %3366 = vmatprep.subr.bf16.mxu1 %v4014_v22  ;;  %3359 = vmatpush3.bf16.msra.mxu0 %v3602_v52 }
 0x852   : > { %3372 = vmatprep.subr.bf16.mxu0 %v4014_v22 }
 0x854   : > { %3367 = vmatpush3.bf16.msra.mxu1 %v3600_v53 }
 0x855   : > { %3378 = vmatprep.subr.bf16.mxu1 %v4014_v22 }
 0x857   : > { %3369 = vmatmul.mubr.msk.bf16.vlgmr.msra.gmra.mrb[20].mxu1 %vm1244_vm3, %v1459_v3 }
 0x858   : > { %3380 = vmatprep.mubr.msk.bf16.mxu1 %vm4016_vm2, %v4014_v22 }
 0x85d   : > { %3379 = vmatpush3.bf16.xpose.msra.mxu1 %v1859_v56  ;;  %v3603_v56 = vld [vmem:[%s4453_s27 + $0x20] sm:$0xff]  }
 0x85e   : > { %3390 = vmatprep.subr.bf16.mxu1 %v4014_v22 }
 0x864   : > { %3381 = vmatmul.mubr.msk.bf16.vlgmr.msra.gmra.mrb[24].mxu1 %vm1244_vm3, %v1852_v57 }
 0x865   : > { %3392 = vmatprep.mubr.msk.bf16.mxu1 %vm4016_vm2, %v4014_v22 }
 0x91e   : > { %v1633_v58 = vpop.f32.mrb[16].mxu0 }
 0x91f   : > { %v3348_v59 = vpop.f32.mrb[17].mxu0 }
 0x920   : > { %v1636_v60 = vpop.f32.mrb[18].mxu0 }
 0x921   : > { %v3349_v61 = vpop.f32.mrb[19].mxu0 }
 0x922   : > { %v1682_v62 = vpop.f32.mrb[16].mxu1  ;;  %v3604_v61 = vld [vmem:[%s4453_s27 + $0x28] sm:$0xff]  }
 0x923   : > { %v1688_v63 = vpack.c.bf16 %v1682_v62, %v1633_v58  ;;  %v3354_v0 = vpop.f32.mrb[17].mxu1 }
 0x924   : > { %v1685_v1 = vpop.f32.mrb[18].mxu1 }
 0x925   : > { %v3355_v3 = vpop.f32.mrb[19].mxu1  ;;  %3361 = vmatmul.mubr.msk.bf16.vlgmr.msra.gmra.mrb[20].mxu0 %vm1244_vm3, %v1688_v63 }
 0x926   : > { %3373 = vmatpush3.bf16.xpose.msra.mxu0 %v1809_v2  ;;  %3374 = vmatprep.mubr.msk.bf16.mxu0 %vm4016_vm2, %v4014_v22 }
 0x927   : > { %3384 = vmatprep.subr.bf16.mxu0 %v4014_v22 }
 0x92a   : > { %v1794_v4 = vpop.f32.mrb[20].mxu1 }
 0x92b   : > { %v3370_v5 = vpop.f32.mrb[21].mxu1 }
 0x92c   : > { %v1797_v7 = vpop.f32.mrb[22].mxu1 }
 0x92d   : > { %v3371_v8 = vpop.f32.mrb[23].mxu1  ;;  %3375 = vmatmul.mubr.msk.bf16.vlgmr.msra.gmra.mrb[24].mxu0 %vm1244_vm3, %v1802_v6 }
 0x92e   : > { %3386 = vmatprep.mubr.msk.bf16.mxu0 %vm4016_vm2, %v4014_v22 }
 0x937   : > { %v1895_v9 = vpop.f32.mrb[24].mxu1 }
 0x938   : > { %v1902_v10 = vmul.f32 0.17677669, %v1895_v9  ;;  %v3382_v12 = vpop.f32.mrb[25].mxu1 }
 0x939   : > { %v1898_v13 = vpop.f32.mrb[26].mxu1 }
 0x93a   : > { %v3383_v14 = vpop.f32.mrb[27].mxu1  ;;  %v1906_v15 = vsel %vm1339_vm5, %v1902_v10, -inf }
 0x93b   : > { %1907 = vmax.xlane.f32.xlu1 %v1906_v15 }
 0x94c   : > { %1975 = vrot.lane.b32.xlu1 %v4576_v21, %s4018_s18 }
 0x950   : > { %2084 = vrot.lane.b32.xlu1 %v4562_v11, %s4019_s3 }
 0x954   : > { %2134 = vrot.lane.b32.xlu1 %v4564_v16, %s4019_s3 }
 0x958   : > { %2132 = vrot.lane.b32.xlu1 %v4578_v23, %s4019_s3 }
 0x9c8   : > { %v1908_v17 = vpop.xlane.xlu1 %1907 }
 0x9c9   : > { %v1910_v25 = vsub.f32 %v1902_v10, %v1908_v17 }
 0x9cb   : > { %v1913_v26 = vmul.f32 1.442695, %v1910_v25 }
 0x9cc   : > { %v1976_v18 = vpop.permute.xlu1 %1975 }
 0x9cd   : > { %v1981_v24 = vsel %vm1369_vm4, %v1976_v18, 0  ;;  %3667 = vpow2.f32 %v1913_v26 }
 0x9ce   : > { %3391 = vmatpush3.bf16.msra.mxu1 %v1981_v24 }
 0x9cf   : > { %3404 = vmatprep.subr.bf16.mxu1 %v4014_v22 }
 0x9d0   : > { %v2085_v46 = vpop.permute.xlu1 %2084 }
 0x9d1   : > { %v2090_v49 = vsel %vm1244_vm3, %v2085_v46, 0 }
 0x9d7   : > { %v3668_v36 = vpop.eup %3667 }
 0x9d8   : > { %v1918_v37 = vsel %vm1339_vm5, %v3668_v36, 0.0 }
 0x9f8   : > { %v1738_v27 = vpop.f32.mrb[20].mxu0 }
 0x9f9   : > { %v4692_v28 = vadd.f32 %v1794_v4, %v1738_v27  ;;  %v3362_v29 = vpop.f32.mrb[21].mxu0  ;;  %v2135_v4 = vpop.permute.xlu1 %2134 }
 0x9fa   : > { %v1741_v11 = vpop.f32.mrb[22].mxu0  ;;  %v2140_v9 = vsel %vm1244_vm3, %v2135_v4, 0 }
 0x9fb   : > { %v4694_v30 = vadd.f32 %v1797_v7, %v1741_v11  ;;  %v3363_v16 = vpop.f32.mrb[23].mxu0 }
 0x9fd   : > { %v2133_v12 = vpop.permute.xlu1 %2132 }
 0xa00   : > { %v1845_v31 = vpop.f32.mrb[24].mxu0 }
 0xa01   : > { %v1901_v23 = vmul.f32 0.17677669, %v1845_v31  ;;  %v3376_v32 = vpop.f32.mrb[25].mxu0 }
 0xa02   : > { %v1848_v33 = vpop.f32.mrb[26].mxu0 }
 0xa03   : > { %v3377_v34 = vpop.f32.mrb[27].mxu0  ;;  %v1903_v35 = vsel %vm1339_vm5, %v1901_v23, -inf }
 0xa04   : > { %1904 = vmax.xlane.f32.xlu0 %v1903_v35 }
 0xa08   : > { %1919 = vadd.xlane.f32.xlu0 %v1918_v37 }
 0xa91   : > { %v1905_v38 = vpop.xlane.xlu0 %1904 }
 0xa92   : > { %v1909_v39 = vsub.f32 %v1901_v23, %v1905_v38 }
 0xa94   : > { %v1911_v40 = vmul.f32 1.442695, %v1909_v39 }
 0xa95   : > { %v1920_v41 = vpop.xlane.xlu0 %1919 }
 0xa96   : > { %3669 = vpow2.f32 %v1911_v40 }
 0xa97   : > { %3671 = vrcp.f32 %v1920_v41 }
 0xaa0   : > { %v3670_v42 = vpop.eup %3669 }
 0xaa1   : > { %v3672_v43 = vpop.eup %3671  ;;  %v1915_v44 = vsel %vm1339_vm5, %v3670_v42, 0.0 }
 0xaa2   : > { %v1924_v45 = vmul.f32 %v3672_v43, %v3668_v36  ;;  %1916 = vadd.xlane.f32.xlu0 %v1915_v44 }
 0xaa4   : > { %v1926_v47 = vpack.c.bf16 %v1924_v45, %v1924_v45 }
 0xaa6   : > { %3393 = vmatmul.mubr.msk.bf16.vlgmr.msra.gmra.mrb[28].mxu1 %vm1339_vm5, %v1926_v47 }
 0xaa7   : > { %3405 = vmatpush3.bf16.xpose.msra.mxu1 %v2090_v49  ;;  %3406 = vmatprep.mubr.msk.bf16.mxu1 %vm4016_vm2, %v4014_v22  ;;  %v3605_v49 = vld [vmem:[%s4453_s27 + $0x30] sm:$0xff]  }
 0xaa8   : > { %3416 = vmatprep.subr.bf16.mxu1 %v4014_v22 }
 0xab8   : > { %1927 = vrot.lane.b32.xlu0 %v4571_v19, %s4018_s18 }
 0xabc   : > { %2082 = vrot.lane.b32.xlu0 %v4574_v20, %s4019_s3 }
 0xb2f   : > { %v1917_v50 = vpop.xlane.xlu0 %1916 }
 0xb30   : > { %3673 = vrcp.f32 %v1917_v50  ;;  %v3606_v50 = vld [vmem:[%s4453_s27 + $0x38] sm:$0xff]  }
 0xb33   : > { %v1928_v51 = vpop.permute.xlu0 %1927 }
 0xb34   : > { %v1933_v52 = vsel %vm1369_vm4, %v1928_v51, 0 }
 0xb35   : > { %3385 = vmatpush3.bf16.msra.mxu0 %v1933_v52 }
 0xb36   : > { %3396 = vmatprep.subr.bf16.mxu0 %v4014_v22 }
 0xb37   : > { %v2083_v53 = vpop.permute.xlu0 %2082 }
 0xb38   : > { %3407 = vmatmul.mubr.msk.bf16.vlgmr.msra.gmra.mrb[32].mxu1 %vm1244_vm3, %v2083_v53 }
 0xb39   : > { %3418 = vmatprep.mubr.msk.bf16.mxu1 %vm4016_vm2, %v4014_v22 }
 0xb3a   : > { %v3674_v54 = vpop.eup %3673 }
 0xb3b   : > { %v1923_v55 = vmul.f32 %v3674_v54, %v3670_v42 }
 0xb3d   : > { %v1925_v57 = vpack.c.bf16 %v1923_v55, %v1923_v55 }
 0xb3f   : > { %3387 = vmatmul.mubr.msk.bf16.vlgmr.msra.gmra.mrb[28].mxu0 %vm1339_vm5, %v1925_v57 }
 0xb40   : > { %3397 = vmatpush3.bf16.msra.mxu0 %v3603_v56  ;;  %3400 = vmatprep.mubr.msk.bf16.mxu0 %vm4016_vm2, %v4014_v22 }
 0xb41   : > { %3398 = vmatprep.subr.bf16.mxu0 %v4014_v22 }
 0xb44   : > { %3399 = vmatpush3.bf16.msra.mxu0 %v3604_v61  ;;  %v3150_v61 = vld [vmem:[%s824_s21] ss:$0 sm:$0xff] }
 0xb45   : > { %3410 = vmatprep.subr.bf16.mxu0 %v4014_v22 }
 0xb79   : > { %v2017_v20 = vpop.f32.mrb[28].mxu1 }
 0xb7a   : > { %v3394_v58 = vpop.f32.mrb[29].mxu1 }
 0xb7b   : > { %v2020_v59 = vpop.f32.mrb[30].mxu1 }
 0xb7c   : > { %v3395_v60 = vpop.f32.mrb[31].mxu1 }
 0xc0b   : > { %v2126_v62 = vpop.f32.mrb[32].mxu1 }
 0xc0c   : > { %v2182_v63 = vmul.f32 0.17677669, %v2126_v62  ;;  %v3408_v0 = vpop.f32.mrb[33].mxu1  ;;  %v3695_v62 = vld [vmem:[#allocation2] sm:$0xff] }
 0xc0d   : > { %v2129_v1 = vpop.f32.mrb[34].mxu1 }
 0xc0e   : > { %v3409_v2 = vpop.f32.mrb[35].mxu1  ;;  %v2184_v3 = vsel %vm1339_vm5, %v2182_v63, -inf }
 0xc0f   : > { %2185 = vmax.xlane.f32.xlu0 %v2184_v3  ;;  %v3696_v2 = vld [vmem:[#allocation2 + $0x8] sm:$0xff] }
 0xc12   : > { %v1969_v5 = vpop.f32.mrb[28].mxu0 }
 0xc13   : > { %v2023_v6 = vpack.c.bf16 %v2017_v20, %v1969_v5  ;;  %v3388_v7 = vpop.f32.mrb[29].mxu0 }
 0xc14   : > { %v1972_v8 = vpop.f32.mrb[30].mxu0  ;;  %v3609_v7 = vld [vmem:[%s4455_s9 + $0x4] ss:$8 sps:$4 sm:$0xff]  }
 0xc15   : > { %v3389_v10 = vpop.f32.mrb[31].mxu0  ;;  %3401 = vmatmul.mubr.msk.bf16.vlgmr.msra.gmra.mrb[32].mxu0 %vm1244_vm3, %v2023_v6  ;;  %v3607_v6 = vld [vmem:[%s4455_s9] ss:$8 sps:$4 sm:$0xff]   ;;  %v3612_v8 = vld [vmem:[%s4455_s9 + $0x14] ss:$8 sps:$4 sm:$0xff]  }
 0xc16   : > { %3411 = vmatpush3.bf16.xpose.msra.mxu0 %v2140_v9  ;;  %3412 = vmatprep.mubr.msk.bf16.mxu0 %vm4016_vm2, %v4014_v22  ;;  %v3610_v9 = vld [vmem:[%s4455_s9 + $0x10] ss:$8 sps:$4 sm:$0xff]  }
 0xc17   : > { %3422 = vmatprep.subr.bf16.mxu0 %v4014_v22 }
 0xc1d   : > { %3413 = vmatmul.mubr.msk.bf16.vlgmr.msra.gmra.mrb[36].mxu0 %vm1244_vm3, %v2133_v12 }
 0xc1e   : > { %3424 = vmatprep.mubr.msk.bf16.mxu0 %vm4016_vm2, %v4014_v22 }
 0xc9c   : > { %v2186_v13 = vpop.xlane.xlu0 %2185 }
 0xc9d   : > { %v2190_v14 = vsub.f32 %v2182_v63, %v2186_v13 }
 0xc9f   : > { %v2192_v15 = vmul.f32 1.442695, %v2190_v14 }
 0xca1   : > { %3675 = vpow2.f32 %v2192_v15 }
 0xcab   : > { %v3676_v17 = vpop.eup %3675 }
 0xcac   : > { %v2196_v18 = vsel %vm1339_vm5, %v3676_v17, 0.0 }
 0xcad   : > { %2197 = vadd.xlane.f32.xlu0 %v2196_v18 }
 0xce8   : > { %v2073_v24 = vpop.f32.mrb[32].mxu0 }
 0xce9   : > { %v2080_v25 = vadd.f32 %v2073_v24, %v4692_v28  ;;  %v3402_v26 = vpop.f32.mrb[33].mxu0 }
 0xcea   : > { %v2076_v27 = vpop.f32.mrb[34].mxu0  ;;  %v3613_v26 = vld [vmem:[%s4455_s9 + $0x20] ss:$8 sps:$4 sm:$0xff]  }
 0xceb   : > { %v2081_v29 = vadd.f32 %v2076_v27, %v4694_v30  ;;  %v3403_v11 = vpop.f32.mrb[35].mxu0  ;;  %v3618_v27 = vld [vmem:[%s4455_s9 + $0x34] ss:$8 sps:$4 sm:$0xff]  }
 0xcec   : > { %v3621_v11 = vld [vmem:[%s4455_s9 + $0x44] ss:$8 sps:$4 sm:$0xff]  }
 0xcf0   : > { %v2176_v16 = vpop.f32.mrb[36].mxu0 }
 0xcf1   : > { %v2183_v31 = vmul.f32 0.17677669, %v2176_v16  ;;  %v3414_v23 = vpop.f32.mrb[37].mxu0  ;;  %v3619_v16 = vld [vmem:[%s4455_s9 + $0x40] ss:$8 sps:$4 sm:$0xff]  }
 0xcf2   : > { %v2179_v32 = vpop.f32.mrb[38].mxu0  ;;  %v3622_v23 = vld [vmem:[%s4455_s9 + $0x50] ss:$8 sps:$4 sm:$0xff]  }
 0xcf3   : > { %v3415_v33 = vpop.f32.mrb[39].mxu0  ;;  %v2187_v34 = vsel %vm1339_vm5, %v2183_v31, -inf  ;;  %v3625_v32 = vld [vmem:[%s4455_s9 + $0x60] ss:$8 sps:$4 sm:$0xff]  }
 0xcf4   : > { %2188 = vmax.xlane.f32.xlu1 %v2187_v34  ;;  %v3627_v33 = vld [vmem:[%s4455_s9 + $0x64] ss:$8 sps:$4 sm:$0xff]   ;;  %v3630_v34 = vld [vmem:[%s4455_s9 + $0x74] ss:$8 sps:$4 sm:$0xff]  }
 0xd05   : > { %2256 = vrot.lane.b32.xlu1 %v4576_v21, %s4019_s3 }
 0xd3a   : > { %v2198_v40 = vpop.xlane.xlu0 %2197 }
 0xd81   : > { %v2189_v35 = vpop.xlane.xlu1 %2188 }
 0xd82   : > { %v2191_v36 = vsub.f32 %v2183_v31, %v2189_v35  ;;  %v3624_v31 = vld [vmem:[%s4455_s9 + $0x54] ss:$8 sps:$4 sm:$0xff]   ;;  %v3628_v35 = vld [vmem:[%s4455_s9 + $0x70] ss:$8 sps:$4 sm:$0xff]  }
 0xd84   : > { %v2194_v37 = vmul.f32 1.442695, %v2191_v36 }
 0xd85   : > { %v2257_v28 = vpop.permute.xlu1 %2256 }
 0xd86   : > { %3677 = vpow2.f32 %v2194_v37  ;;  %v2262_v38 = vsel %vm1369_vm4, %v2257_v28, 0 }
 0xd87   : > { %3423 = vmatpush3.bf16.msra.mxu0 %v2262_v38  ;;  %3679 = vrcp.f32 %v2198_v40 }
 0xd88   : > { %2523 = vmatprep.subr.bf16.mxu0 %v3609_v7 }
 0xd90   : > { %v3678_v30 = vpop.eup %3677 }
 0xd91   : > { %v2199_v39 = vsel %vm1339_vm5, %v3678_v30, 0.0  ;;  %v3680_v41 = vpop.eup %3679 }
 0xd92   : > { %2200 = vadd.xlane.f32.xlu0 %v2199_v39  ;;  %v2204_v42 = vmul.f32 %v3680_v41, %v3676_v17  ;;  %v3151_v41 = vld [vmem:[%s827_s1] ss:$0 sm:$0xff] }
 0xd94   : > { %v2206_v45 = vpack.c.bf16 %v2204_v42, %v2204_v42 }
 0xda8   : > { %2208 = vrot.lane.b32.xlu0 %v4571_v19, %s4019_s3 }
 0xe1f   : > { %v2201_v21 = vpop.xlane.xlu0 %2200 }
 0xe20   : > { %3681 = vrcp.f32 %v2201_v21 }
 0xe23   : > { %v2209_v43 = vpop.permute.xlu0 %2208 }
 0xe24   : > { %v2214_v44 = vsel %vm1369_vm4, %v2209_v43, 0 }
 0xe25   : > { %3417 = vmatpush3.bf16.msra.mxu1 %v2214_v44 }
 0xe26   : > { %3428 = vmatprep.subr.bf16.mxu1 %v4014_v22 }
 0xe28   : > { %3419 = vmatmul.mubr.msk.bf16.vlgmr.msra.gmra.mrb[36].mxu1 %vm1339_vm5, %v2206_v45  ;;  %v3152_v45 = vld [vmem:[%s830_s16] ss:$0 sm:$0xff] }
 0xe29   : > { %3432 = vmatprep.mubr.msk.bf16.mxu1 %vm4016_vm2, %v4014_v22  ;;  %3429 = vmatpush3.bf16.msra.mxu1 %v3605_v49 }
 0xe2a   : > { %v3682_v19 = vpop.eup %3681  ;;  %3430 = vmatprep.subr.bf16.mxu1 %v4014_v22 }
 0xe2b   : > { %v2205_v46 = vmul.f32 %v3682_v19, %v3678_v30 }
 0xe2d   : > { %v2207_v47 = vpack.c.bf16 %v2205_v46, %v2205_v46  ;;  %3431 = vmatpush3.bf16.msra.mxu1 %v3606_v50  ;;  %v3631_v50 = vld [vmem:[%s4495_s10 + $0x40] sm:$0xff]  }
 0xe2e   : > { %3254 = vmatprep.subr.bf16.mxu1 %v3631_v50 }
 0xe2f   : > { %3425 = vmatmul.mubr.msk.bf16.vlgmr.msra.gmra.mrb[40].mxu0 %vm1339_vm5, %v2207_v47 }
 0xe30   : > { %2555 = vmatprep.mubr.bf16.mxu0 %v4015_v48  ;;  %2524 = vmatpush1.bf16.msra.mxu0 %v3607_v6 }
 0xe31   : > { %2525 = vmatprep.subr.bf16.mxu0 %v3612_v8 }
 0xe34   : > { %2526 = vmatpush1.bf16.msra.mxu0 %v3610_v9 }
 0xefb   : > { %v2250_v51 = vpop.f32.mrb[36].mxu1 }
 0xefc   : > { %v3420_v52 = vpop.f32.mrb[37].mxu1 }
 0xefd   : > { %v2253_v53 = vpop.f32.mrb[38].mxu1  ;;  %v3633_v52 = vld [vmem:[%s4495_s10 + $0x48] sm:$0xff]  }
 0xefe   : > { %v3421_v54 = vpop.f32.mrb[39].mxu1  ;;  %v3634_v53 = vld [vmem:[%s4495_s10 + $0x8] sm:$0xff]  }
 0xeff   : > { %v3635_v54 = vld [vmem:[%s4495_s10 + $0x50] sm:$0xff]  }
 0xf02   : > { %v2298_v55 = vpop.f32.mrb[40].mxu0 }
 0xf03   : > { %v2304_v56 = vpack.c.bf16 %v2298_v55, %v2250_v51  ;;  %v3426_v57 = vpop.f32.mrb[41].mxu0  ;;  %v3632_v51 = vld [vmem:[%s4495_s10] sm:$0xff]   ;;  %v3636_v55 = vld [vmem:[%s4495_s10 + $0x10] sm:$0xff]  }
 0xf04   : > { %v2301_v20 = vpop.f32.mrb[42].mxu0  ;;  %v3638_v57 = vld [vmem:[%s4495_s10 + $0x18] sm:$0xff]  }
 0xf05   : > { %v3427_v58 = vpop.f32.mrb[43].mxu0  ;;  %3433 = vmatmul.mubr.msk.bf16.vlgmr.msra.gmra.mrb[40].mxu1 %vm1244_vm3, %v2304_v56  ;;  %v3637_v56 = vld [vmem:[%s4495_s10 + $0x58] sm:$0xff]   ;;  %v3639_v20 = vld [vmem:[%s4495_s10 + $0x60] sm:$0xff]  }
 0xf06   : > { %3255 = vmatpush3.bf16.msra.mxu1 %v3632_v51  ;;  %v3640_v58 = vld [vmem:[%s4495_s10 + $0x20] sm:$0xff]  }
 0xf07   : > { %3256 = vmatprep.subr.bf16.mxu1 %v3633_v52 }
 0xf0a   : > { %3257 = vmatpush3.bf16.msra.mxu1 %v3634_v53 }
 0xf0b   : > { %3258 = vmatprep.subr.bf16.mxu1 %v3635_v54 }
 0xf0e   : > { %3259 = vmatpush3.bf16.msra.mxu1 %v3636_v55 }
 0xf0f   : > { %3260 = vmatprep.subr.bf16.mxu1 %v3637_v56 }
 0xf12   : > { %3261 = vmatpush3.bf16.msra.mxu1 %v3638_v57 }
 0xf13   : > { %3262 = vmatprep.subr.bf16.mxu1 %v3639_v20  ;;  %v3169_v20 = vld [vmem:[%s837_s29] ss:$0 sm:$0xff] }
 0xf16   : > { %3263 = vmatpush3.bf16.msra.mxu1 %v3640_v58 }
 0xfd8   : > { %v2354_v48 = vpop.f32.mrb[40].mxu1 }
 0xfd9   : > { %v2361_v59 = vadd.f32 %v2354_v48, %v2080_v25  ;;  %v3434_v22 = vpop.f32.mrb[41].mxu1  ;;  %v3615_v25 = vld [vmem:[%s4455_s9 + $0x24] ss:$8 sps:$4 sm:$0xff]  }
 0xfda   : > { %v2357_v60 = vpop.f32.mrb[42].mxu1  ;;  %2527 = vmatprep.subr.bf16.mxu0 %v3615_v25  ;;  %v3641_v48 = vld [vmem:[%s4495_s10 + $0x68] sm:$0xff]   ;;  %v3643_v22 = vld [vmem:[%s4495_s10 + $0x70] sm:$0xff]  }
 0xfdb   : > { %v2363_v63 = vadd.f32 %v3695_v62, %v2361_v59  ;;  %v2362_v0 = vadd.f32 %v2357_v60, %v2081_v29  ;;  %v3435_v1 = vpop.f32.mrb[43].mxu1  ;;  %2528 = vmatpush1.bf16.msra.mxu0 %v3613_v26  ;;  %v3616_v29 = vld [vmem:[%s4455_s9 + $0x30] ss:$8 sps:$4 sm:$0xff]   ;;  %v3642_v59 = vld [vmem:[%s4495_s10 + $0x28] sm:$0xff]   ;;  %3264 = vmatprep.subr.bf16.mxu1 %v3641_v48 }
 0xfdc   : > { %2529 = vmatprep.subr.bf16.mxu0 %v3618_v27  ;;  %3265 = vmatpush3.bf16.msra.mxu1 %v3642_v59  ;;  %v3644_v60 = vld [vmem:[%s4495_s10 + $0x30] sm:$0xff]   ;;  %v3646_v62 = vld [vmem:[%s4495_s10 + $0x38] sm:$0xff]  }
 0xfdd   : > { %v2364_v3 = vadd.f32 %v3696_v2, %v2362_v0  ;;  %v4755_v4 = vadd.f32 %v3150_v61, %v2363_v63  ;;  %3266 = vmatprep.subr.bf16.mxu1 %v3643_v22  ;;  %v2433_v63 = vlaneseq  ;;  %v2431_v2 = vld [vmem:[%s4489_s8] sm:$0x3] }
 0xfdf   : > { %2376 = vadd.xlane.f32.xlu1 %v4755_v4  ;;  %v4758_v5 = vadd.f32 %v3150_v61, %v2364_v3  ;;  %2530 = vmatpush1.bf16.msra.mxu0 %v3616_v29  ;;  %v3645_v61 = vld [vmem:[%s4495_s10 + $0x78] sm:$0xff]   ;;  %v2434_v0 = vshrl.u32 %v2433_v63, 7  ;;  %s4977_s10 = sld [smem:[#allocation22_spill]] }
 0xfe0   : > { %2531 = vmatprep.subr.bf16.mxu0 %v3621_v11  ;;  %3267 = vmatpush3.bf16.msra.mxu1 %v3644_v60 }
 0xfe1   : > { %2378 = vadd.xlane.f32.xlu0 %v4758_v5  ;;  %3268 = vmatprep.subr.bf16.mxu1 %v3645_v61  ;;  %v2435_v1 = vsub.s32 0, %v2434_v0  ;;  %v2439_v3 = vsub.s32 1, %v2434_v0 }
 0xfe3   : > { %2532 = vmatpush1.bf16.msra.mxu0 %v3619_v16  ;;  %v2436_v6 = vrot.slane %v2431_v2, %v2435_v1  ;;  %v2440_v7 = vrot.slane %v2431_v2, %v2439_v3 }
 0xfe4   : > { %2533 = vmatprep.subr.bf16.mxu0 %v3624_v31  ;;  %3269 = vmatpush3.bf16.msra.mxu1 %v3646_v62 }
 0xfe5   : > { %p3186_p2 = scmp.ne.s32.totalorder %s4977_s10, 1 }
 0xfe6   : > { %s4978_s13 = sld [smem:[#allocation41_spill]] (!%p3186_p2)  ;;  %s4979_s14 = sld [smem:[#allocation42_spill]] (!%p3186_p2) }
 0xfe7   : > { %2534 = vmatpush1.bf16.msra.mxu0 %v3622_v23 }
 0xfe8   : > { %2535 = vmatprep.subr.bf16.mxu0 %v3627_v33 }
 0xfeb   : > { %2536 = vmatpush1.bf16.msra.mxu0 %v3625_v32 }
 0xfec   : > { %2537 = vmatprep.subr.bf16.mxu0 %v3630_v34 }
 0xfef   : > { %2538 = vmatpush1.bf16.msra.mxu0 %v3628_v35 }
0x106c   : > { %v2377_v10 = vpop.xlane.xlu1 %2376 }
0x106d   : > { %v2380_v12 = vmul.f32 0.0078125, %v2377_v10 }
0x106e   : > { %v2379_v13 = vpop.xlane.xlu0 %2378 }
0x106f   : > { %v2382_v14 = vsub.f32 %v4755_v4, %v2380_v12  ;;  %v2381_v15 = vmul.f32 0.0078125, %v2379_v13 }
0x1071   : > { %v2383_v17 = vsub.f32 %v4758_v5, %v2381_v15  ;;  %v2384_v18 = vmul.f32 %v2382_v14, %v2382_v14 }
0x1073   : > { %2386 = vadd.xlane.f32.xlu0 %v2384_v18  ;;  %v2385_v24 = vmul.f32 %v2383_v17, %v2383_v17 }
0x1075   : > { %2388 = vadd.xlane.f32.xlu1 %v2385_v24 }
0x1100   : > { %v2387_v36 = vpop.xlane.xlu0 %2386 }
0x1101   : > { %v2390_v37 = vmul.f32 0.0078125, %v2387_v36 }
0x1102   : > { %v2389_v28 = vpop.xlane.xlu1 %2388 }
0x1103   : > { %v2392_v38 = vadd.f32 1e-05, %v2390_v37  ;;  %v2391_v30 = vmul.f32 0.0078125, %v2389_v28 }
0x1105   : > { %3683 = vrsqrt.f32 %v2392_v38  ;;  %v2393_v39 = vadd.f32 1e-05, %v2391_v30 }
0x1107   : > { %3685 = vrsqrt.f32 %v2393_v39 }
0x110f   : > { %v3684_v40 = vpop.eup %3683 }
0x1110   : > { %v2396_v21 = vmul.f32 %v3684_v40, %v2382_v14 }
0x1111   : > { %v3686_v42 = vpop.eup %3685 }
0x1112   : > { %v2397_v43 = vmul.f32 %v3686_v42, %v2383_v17  ;;  %v2404_v44 = vmul.f32 %v3151_v41, %v2396_v21 }
0x1114   : > { %v2405_v19 = vmul.f32 %v3151_v41, %v2397_v43  ;;  %v2412_v46 = vadd.f32 %v3152_v45, %v2404_v44 }
0x1116   : > { %v2413_v47 = vadd.f32 %v3152_v45, %v2405_v19 }
0x1118   : > { %v2414_v49 = vpack.c.bf16 %v2413_v47, %v2412_v46 }
0x111a   : > { %2556 = vmatmul.mubr.bf16.vlgmr.msra.gmra.mrb[44].mxu0 %v2414_v49 }
0x11ed   : > { %v2557_v8 = vpop.f32.mrb[44].mxu0 }
0x11ee   : > { %v2558_v9 = vadd.f32 %v2557_v8, %v2436_v6  ;;  %v2559_v10 = vpop.f32.mrb[45].mxu0 }
0x11ef   : > { %v2560_v12 = vadd.f32 %v2559_v10, %v2440_v7  ;;  %v2561_v13 = vpop.f32.mrb[46].mxu0 }
0x11f0   : > { %v2570_v14 = vmul.f32 0.044715, %v2558_v9  ;;  %v2562_v15 = vadd.f32 %v2561_v13, %v2436_v6  ;;  %v2563_v17 = vpop.f32.mrb[47].mxu0  ;;  %v2566_v45 = vmul.f32 0.5, %v2558_v9 }
0x11f1   : > { %v2571_v18 = vmul.f32 0.044715, %v2560_v12  ;;  %v2564_v24 = vadd.f32 %v2563_v17, %v2440_v7  ;;  %v2567_v47 = vmul.f32 0.5, %v2560_v12 }
0x11f2   : > { %v2574_v25 = vmul.f32 %v2570_v14, %v2558_v9  ;;  %v2572_v26 = vmul.f32 0.044715, %v2562_v15  ;;  %v2568_v19 = vmul.f32 0.5, %v2562_v15 }
0x11f3   : > { %v2575_v27 = vmul.f32 %v2571_v18, %v2560_v12  ;;  %v2573_v29 = vmul.f32 0.044715, %v2564_v24  ;;  %v2569_v49 = vmul.f32 0.5, %v2564_v24  ;;  %v3187_v18 = vld [vmem:[%s4978_s13] ss:$0 sm:$0xff] (!%p3186_p2) }
0x11f4   : > { %v2578_v11 = vmul.f32 %v2574_v25, %v2558_v9  ;;  %v2576_v16 = vmul.f32 %v2572_v26, %v2562_v15  ;;  %v3188_v25 = vld [vmem:[%s4979_s14] ss:$0 sm:$0xff] (!%p3186_p2) }
0x11f5   : > { %v2579_v31 = vmul.f32 %v2575_v27, %v2560_v12  ;;  %v2577_v23 = vmul.f32 %v2573_v29, %v2564_v24 }
0x11f6   : > { %v2582_v32 = vadd.f32 %v2578_v11, %v2558_v9  ;;  %v2580_v33 = vmul.f32 %v2576_v16, %v2562_v15 }
0x11f7   : > { %v2581_v34 = vmul.f32 %v2577_v23, %v2564_v24  ;;  %v2583_v35 = vadd.f32 %v2579_v31, %v2560_v12 }
0x11f8   : > { %v2586_v36 = vmul.f32 0.7978846, %v2582_v32  ;;  %v2584_v37 = vadd.f32 %v2580_v33, %v2562_v15 }
0x11f9   : > { %v2585_v28 = vadd.f32 %v2581_v34, %v2564_v24  ;;  %v2587_v38 = vmul.f32 0.7978846, %v2583_v35 }
0x11fa   : > { %3687 = vtanh.f32 %v2586_v36  ;;  %v2588_v30 = vmul.f32 0.7978846, %v2584_v37 }
0x11fb   : > { %v2589_v39 = vmul.f32 0.7978846, %v2585_v28  ;;  %3689 = vtanh.f32 %v2587_v38 }
0x11fc   : > { %3691 = vtanh.f32 %v2588_v30 }
0x11fd   : > { %3693 = vtanh.f32 %v2589_v39 }
0x1204   : > { %v3688_v40 = vpop.eup %3687 }
0x1205   : > { %v3690_v41 = vpop.eup %3689  ;;  %v2594_v21 = vadd.f32 1.0, %v3688_v40 }
0x1206   : > { %v3692_v42 = vpop.eup %3691  ;;  %v2595_v43 = vadd.f32 1.0, %v3690_v41 }
0x1207   : > { %v3694_v44 = vpop.eup %3693  ;;  %v2596_v46 = vadd.f32 1.0, %v3692_v42  ;;  %v2598_v51 = vmul.f32 %v2594_v21, %v2566_v45 }
0x1208   : > { %v2597_v50 = vadd.f32 1.0, %v3694_v44  ;;  %v2599_v53 = vmul.f32 %v2595_v43, %v2567_v47 }
0x1209   : > { %v2600_v52 = vmul.f32 %v2596_v46, %v2568_v19 }
0x120a   : > { %v2601_v54 = vmul.f32 %v2597_v50, %v2569_v49 }
0x120b   : > { %v2602_v55 = vpack.c.bf16 %v2600_v52, %v2598_v51 }
0x120c   : > { %v2603_v56 = vpack.c.bf16 %v2601_v54, %v2599_v53 }
0x120e   : > { %2771 = vmatprep.mubr.bf16.mxu1 %v2603_v56 }
0x120f   : > { %2772 = vmatmul.mubr.bf16.vlgmr.msra.gmra.mrb[44].mxu1 %v2602_v55 }
0x12e2   : > { %v3270_v57 = vpop.f32.mrb[44].mxu1 }
0x12e3   : > { %v3271_v58 = vpop.f32.mrb[45].mxu1 }
0x12e4   : > { %v3272_v48 = vadd.f32 %v3271_v58, %v3270_v57  ;;  %v3273_v59 = vpop.f32.mrb[46].mxu1 }
0x12e5   : > { %v3274_v22 = vpop.f32.mrb[47].mxu1 }
0x12e6   : > { %v2774_v60 = vadd.f32 %v3272_v48, %v3169_v20  ;;  %v3275_v61 = vadd.f32 %v3274_v22, %v3273_v59  ;;  %2787 = sbr.rel (%p3186_p2) target bundleno = 5158 (0x1426), region = 124 }
0x12e8   : > { %v2780_v62 = vadd.f32 %v2774_v60, %v4755_v4  ;;  %v2777_v63 = vadd.f32 %v3275_v61, %v3169_v20 }
0x12ea   : > { %2782 = vst [vmem:[#allocation2] sm:$0xff] %v2780_v62  ;;  %v2781_v0 = vadd.f32 %v2777_v63, %v4758_v5  ;;  %2790 = vadd.xlane.f32.xlu0 (!%p3186_p2), %v2780_v62 }
0x12ec   : > { %2783 = vst [vmem:[#allocation2 + $0x8] sm:$0xff] %v2781_v0 }
0x12ee   : > { %2792 = vadd.xlane.f32.xlu0 %v2781_v0 }
0x1377   : > { %v2791_v1 = vpop.xlane.xlu0 %2790 }
0x1378   : > { %v2794_v2 = vmul.f32 0.0078125, %v2791_v1 }
0x137a   : > { %v2796_v3 = vsub.f32 %v2780_v62, %v2794_v2 }
0x137b   : > { %v2793_v6 = vpop.xlane.xlu0 %2792 }
0x137c   : > { %v2795_v7 = vmul.f32 0.0078125, %v2793_v6  ;;  %v2798_v8 = vmul.f32 %v2796_v3, %v2796_v3 }
0x137e   : > { %v2797_v9 = vsub.f32 %v2781_v0, %v2795_v7  ;;  %2800 = vadd.xlane.f32.xlu1 %v2798_v8 }
0x1380   : > { %v2799_v10 = vmul.f32 %v2797_v9, %v2797_v9 }
0x1382   : > { %2802 = vadd.xlane.f32.xlu1 %v2799_v10 }
0x140b   : > { %v2801_v4 = vpop.xlane.xlu1 %2800 }
0x140c   : > { %v2804_v12 = vmul.f32 0.0078125, %v2801_v4 }
0x140e   : > { %v2806_v13 = vadd.f32 1e-05, %v2804_v12 }
0x140f   : > { %v2803_v5 = vpop.xlane.xlu1 %2802 }
0x1410   : > { %3697 = vrsqrt.f32 %v2806_v13  ;;  %v2805_v14 = vmul.f32 0.0078125, %v2803_v5 }
0x1412   : > { %v2807_v15 = vadd.f32 1e-05, %v2805_v14 }
0x1414   : > { %3699 = vrsqrt.f32 %v2807_v15 }
0x141a   : > { %v3698_v17 = vpop.eup %3697 }
0x141b   : > { %v2810_v24 = vmul.f32 %v3698_v17, %v2796_v3 }
0x141d   : > { %v2818_v26 = vmul.f32 %v3187_v18, %v2810_v24 }
0x141e   : > { %v3700_v27 = vpop.eup %3699 }
0x141f   : > { %v2826_v29 = vadd.f32 %v3188_v25, %v2818_v26  ;;  %v2811_v11 = vmul.f32 %v3700_v27, %v2797_v9 }
0x1421   : > { %2828 = vst [vmem:[#allocation15] sm:$0xff] %v2826_v29  ;;  %v2819_v16 = vmul.f32 %v3187_v18, %v2811_v11 }
0x1423   : > { %v2827_v31 = vadd.f32 %v3188_v25, %v2819_v16 }
0x1425   : > { %2829 = vst [vmem:[#allocation15 + $0x8] sm:$0xff] %v2827_v31 }
0x1426 PF: > { %p3493_p8 = scmp.eq.s32.totalorder %s4142_s0, 1  ;;  %s4020_s23 = smov [#allocation15]  }
0x1427   : > { %s2839_s17 = sshll.u32 %s4020_s23, 4  ;;  %s2840_s17 = int_to_ptr.vmem [resolvable:$true] %s2839_s17 }
0x1428   : > { %s3905_s5 = scalar_lea.vmem %s2840_s17, 256  ;;  %p3912_p10 = scmp.lt.s32.totalorder %s2840_s17, %s2840_s17 }
0x1429   : > { %p3906_p12 = scmp.ne.s32.totalorder %s2840_s17, %s3905_s5  ;;  %p3913_p13 = scmp.lt.s32.totalorder %s3905_s5, %s3905_s5 }
0x142b   : > { %p3907_p1 = pnand %p3906_p12, %p3493_p8  ;;  %p3914_p5 = por %p3913_p13, %p3912_p10 }
0x142d   : > { %p3908_p7 = pneg %p3907_p1 }
0x142f   : > { %p3915_p0 = pnand %p3914_p5, %p3908_p7 }
0x1431   : > { %3918 = shalt.err (!%p3915_p0)
}
0x1432   : > { %s4980_s30 = sld [smem:[#allocation43_spill]] }
0x1438   : > { %s3919_s18 = scalar_lea.hbm %s4980_s30, 256 }
0x1439   : > { %p3920_p9 = scmp.ne.s32.totalorder %s4980_s30, %s3919_s18  ;;  %p3925_p6 = scmp.lt.u32.totalorder %s3919_s18, %s4980_s30 }
0x143b   : > { %p3921_p3 = pnand %p3920_p9, %p3493_p8 }
0x143d   : > { %p3922_p11 = pneg %p3921_p3 }
0x143f   : > { %p3927_p4 = pnand %p3925_p6, %p3922_p11 }
0x1441   : > { %3930 = shalt.err (!%p3927_p4)
}
0x1442   : > { %s4021_s21 = smov 128   ;;  %s4022_s20 = smov 8  }
0x1443   : > { %3460 = dma.vmem_to_hbm [thread:$0]  (%p3493_p8), %s2840_s17, 256, %s4980_s30, [#allocation5], %s4021_s21, %s4021_s21, %s4022_s20  }
0x1444   : > { %3972 = dma.done.wait (%p3493_p8), [#allocation5], 256  }
0x1445   : > { %3974 = vsyncadd (%p3493_p8), [#allocation5], 4294967040 }
0x1446 PF: > { %s4981_s2 = sld [smem:[#allocation23_spill]]  ;;  %s4982_s7 = sld [smem:[#allocation21_spill]] }
0x1447   : > { %s4983_s26 = sld [smem:[#allocation25_spill]]  ;;  %s4984_s8 = sld [smem:[#allocation24_spill]] }
0x1448   : > { %s4985_s24 = smov %s3981_s25  ;;  %s4987_s27 = smov %s3993_s28 }
0x144c   : > { %s36_s29 = sadd.s32 1, %s4981_s2   ;;  %s4986_s25 = smov %s4982_s7 }
0x144d   : > { %p33_p2 = scmp.ge.s32.totalorder %s36_s29, 4   ;;  %s4988_s28 = smov %s4984_s8 }
0x144f   :  { %35 = sbr.rel (!%p33_p2) target bundleno = 28 (0x1c), region = 204 }
0x1456   :  { %2855 = vsyncpa [#allocation4], 1 }
0x1457   :  { %2857 = vsyncpa [#allocation4 + $0x1], 1 }
0x1458   :  { %2858 = vsyncpa [#allocation7], 1 }
0x1459   :  { %2859 = vsyncpa [#allocation10], 1 }
0x145a   :  { %2861 = vsyncpa [#allocation10 + $0x1], 1 }
0x145b   :  { %2862 = vsyncpa [#allocation13], 1 }
0x145c   :  { %2864 = vsyncpa [#allocation13 + $0x1], 1 }
0x145d   :  { %2865 = vsyncpa [#allocation5], 1 }
0x145e   :  { %2867 = vsyncpa [#allocation5 + $0x1], 1 }

</bundles_post_ra>
